<compile_context>
chip_gen: v5e
topology: v5e:2x2
jax: 0.10.0
libtpu: 0.0.40
codegen_flags: <defaults>
</compile_context>

<pallas_src>
import numpy as np
import jax
import jax.numpy as jnp
from jax.experimental import pallas as pl
from jax.experimental.pallas import tpu as pltpu

# ----- constants mirroring MS_SSIM_L1_LOSS.__init__ -----
GAUSSIAN_SIGMAS = (0.5, 1.0, 2.0, 4.0, 8.0)
DATA_RANGE = 1.0
K1, K2 = 0.01, 0.03
C1 = (K1 * DATA_RANGE) ** 2
C2 = (K2 * DATA_RANGE) ** 2
ALPHA = 0.025
COMPENSATION = 200.0
PAD = int(2 * GAUSSIAN_SIGMAS[-1])               # 16
FILTER_SIZE = int(4 * GAUSSIAN_SIGMAS[-1] + 1)   # 33
NUM_SIGMAS = len(GAUSSIAN_SIGMAS)                # 5
NUM_CH = 3                                       # groups=3 -> 3 input channels
NUM_OUT = 3 * NUM_SIGMAS                         # 15 grouped-conv outputs

# Grouped-conv output j reads input channel j // 5 and uses sigma index j // 3;
# the 15 outputs collapse to 7 distinct (channel, sigma) pairs with these
# multiplicities (powers) inside PIcs = prod_j cs_j.
GROUP_POWER = {(0, 0): 3, (0, 1): 2, (1, 1): 1, (1, 2): 3,
               (1, 3): 1, (2, 3): 2, (2, 4): 3}
# lM = l[:, -1] * l[:, -2] * l[:, -3] -> all three are (c=2, s=4) -> l^3.
# Channels that need each sigma (drives the per-sigma batched row/col pass).
SIGMA_CHANNELS = ((0,), (0, 1), (1,), (1, 2), (2,))


def _gauss_1d(size, sigma):
    coords = np.arange(size, dtype=np.float32) - size // 2
    g = np.exp(-coords ** 2 / (2.0 * sigma ** 2))
    return (g / g.sum()).astype(np.float32)


def _row_band_full(h):
    """(5, h, h) truncated row-direction band matrices: gh[s] @ img
    == 1-D conv of the columns of img with gauss(sigma_s), zero padded."""
    gh = np.zeros((NUM_SIGMAS, h, h), np.float32)
    for s, sigma in enumerate(GAUSSIAN_SIGMAS):
        g = _gauss_1d(FILTER_SIZE, sigma)
        for i in range(h):
            lo, hi = max(0, i - PAD), min(h, i + PAD + 1)
            gh[s, i, lo:hi] = g[lo - i + PAD: hi - i + PAD]
    return gh


def _gh_row_tiles(h, th, kw):
    """Pre-sliced row-pass tiles: tile t covers output rows [t*th, (t+1)*th)
    and input-row window [s0, s0+kw) with s0 = clip(t*th - PAD, 0, h - kw).
    The window always contains every nonzero band entry of those rows, so the
    slice is exactly equivalent to the full (h, h) band matrix."""
    gh = _row_band_full(h)
    nt = h // th
    tiles = np.zeros((nt, NUM_SIGMAS, th, kw), np.float32)
    for t in range(nt):
        s0 = min(max(t * th - PAD, 0), h - kw)
        tiles[t] = gh[:, t * th:(t + 1) * th, s0:s0 + kw]
    return jnp.asarray(tiles)


def _gwt_full(w):
    """(5, w, w) truncated column-direction band matrices: img @ gwt[s]
    == 1-D conv of the rows of img with gauss(sigma_s), zero padded."""
    gwt = np.zeros((NUM_SIGMAS, w, w), np.float32)
    for s, sigma in enumerate(GAUSSIAN_SIGMAS):
        g = _gauss_1d(FILTER_SIZE, sigma)
        for j in range(w):
            lo, hi = max(0, j - PAD), min(w, j + PAD + 1)
            gwt[s, lo:hi, j] = g[lo - j + PAD: hi - j + PAD]
    return jnp.asarray(gwt)


def _msssim_l1_kernel(x_ref, y_ref, gh_ref, gwt_ref, out_ref):
    """One (batch, row-tile) grid step.

    x_ref, y_ref : (1, 3, H, W)    full image of this batch element
    gh_ref       : (1, 5, TH, KW)  row-pass band-matrix tile for this row tile
    gwt_ref      : (5, W, W)       column-pass band matrices (constant)
    out_ref      : (1, 1, 1, 128)  tile loss sum broadcast across 128 lanes
    """
    _, _, H, W = x_ref.shape
    _, _, TH, KW = gh_ref.shape

    # Input-row window matching the pre-sliced Gh tile (same clamp formula as
    # the host-side _gh_row_tiles construction).
    t = pl.program_id(1)
    start = jnp.minimum(jnp.maximum(t * TH - PAD, 0), H - KW)
    if TH % 8 == 0 and H % 8 == 0:
        start = pl.multiple_of(start, 8)        # sublane-aligned window start

    xw = [x_ref[0, c, pl.ds(start, KW), :] for c in range(NUM_CH)]
    yw = [y_ref[0, c, pl.ds(start, KW), :] for c in range(NUM_CH)]

    # Per-channel raw maps, computed once (each channel feeds 1-3 sigmas).
    cmaps = []
    for c in range(NUM_CH):
        xc, yc = xw[c], yw[c]
        cmaps.append((xc, yc, xc * xc, yc * yc, xc * yc))
    # The three sigma=8 L1 masks are identical and conv is linear -> convolve
    # the channel-mean of |x - y| once (folded into the sigma=4 slab below).
    l1m = (jnp.abs(xw[0] - yw[0]) + jnp.abs(xw[1] - yw[1]) +
           jnp.abs(xw[2] - yw[2])) * (1.0 / NUM_CH)

    pics = None     # prod_j cs_j over all 15 grouped-conv outputs
    lM = None       # l(c=2, s=4) ** 3
    g_l1 = None     # channel-mean gaussian L1 map

    # ---- one fused (row pass -> column pass -> cs/l accumulation) per sigma;
    #      each sigma's slabs are consumed before the next is produced. ------
    for s in range(NUM_SIGMAS):
        chans = SIGMA_CHANNELS[s]
        pieces = []
        for c in chans:
            pieces.extend(cmaps[c])
        if s == NUM_SIGMAS - 1:
            pieces.append(l1m)
        n = len(pieces)

        # Row pass: single lane-batched (TH, KW) @ (KW, n*W) MXU matmul.
        slab = jnp.concatenate(pieces, axis=1)                      # (KW, n*W)
        r = jnp.dot(gh_ref[0, s], slab, preferred_element_type=jnp.float32)

        # Column pass, batched per sigma: restack lane chunks along sublanes
        # and contract with the (W, W) band matrix in ONE matmul.
        col_in = jnp.concatenate([r[:, k * W:(k + 1) * W] for k in range(n)],
                                 axis=0)                            # (n*TH, W)
        col = jnp.dot(col_in, gwt_ref[s], preferred_element_type=jnp.float32)

        # Consume this sigma's maps immediately (keeps liveness ~one sigma).
        for gi, c in enumerate(chans):
            base = 5 * gi * TH
            mux = col[base + 0 * TH: base + 1 * TH]
            muy = col[base + 1 * TH: base + 2 * TH]
            exx = col[base + 2 * TH: base + 3 * TH]
            eyy = col[base + 3 * TH: base + 4 * TH]
            exy = col[base + 4 * TH: base + 5 * TH]
            mux2 = mux * mux
            muy2 = muy * muy
            muxy = mux * muy
            sigx2 = exx - mux2
            sigy2 = eyy - muy2
            sigxy = exy - muxy
            # EUP reciprocal; exact mode — approx=True's error would be
            # amplified by the 15-way cs product vs. the 2e-3 tolerance.
            cs = (2.0 * sigxy + C2) * pl.reciprocal(sigx2 + sigy2 + C2,
                                                    approx=False)
            p = GROUP_POWER[(c, s)]
            csp = cs if p == 1 else (cs * cs if p == 2 else cs * cs * cs)
            pics = csp if pics is None else pics * csp
            if c == NUM_CH - 1 and s == NUM_SIGMAS - 1:
                l = (2.0 * muxy + C1) * pl.reciprocal(mux2 + muy2 + C1,
                                                      approx=False)
                lM = l * l * l
        if s == NUM_SIGMAS - 1:
            g_l1 = col[5 * len(chans) * TH:]                        # (TH, W)

    loss_ms_ssim = 1.0 - lM * pics
    loss_mix = ALPHA * loss_ms_ssim + ((1.0 - ALPHA) / DATA_RANGE) * g_l1
    total = COMPENSATION * jnp.sum(loss_mix)
    # In-kernel reduction: store the tile sum broadcast across one 128-lane
    # row (a single unmasked vst) instead of the full (H, W) loss map.
    out_ref[0, 0] = jnp.full((1, 128), total, dtype=jnp.float32)


def _pick_row_tile(h, requested=None):
    if requested is not None:
        requested = int(requested)
        if h % requested != 0:
            raise ValueError(f"row_tile={requested} must divide H={h}")
        return requested
    if h <= 256:
        return h
    for th in (256, 192, 128, 96, 64, 48, 32, 16, 8):
        if h % th == 0:
            return th
    return h


def ms_ssim_l1_loss(x, y, *, row_tile=None):
    """x, y: (B, 3, H, W) float, NCHW.  Returns the scalar MS-SSIM + L1 loss.

    NOTE: lane-dense W (multiple of 128, ideally 256 on v6e/v7x) avoids
    relayout copies on the per-map lane slices; zero-padding W here would
    change boundary conv values and the mean divisor, so it is left to the
    caller's data pipeline.
    """
    b, c, h, w = x.shape
    assert c == NUM_CH, "groups=3 conv requires 3 input channels"
    assert y.shape == x.shape

    th = _pick_row_tile(h, row_tile)
    nt = h // th
    kw = min(th + 2 * PAD, h)       # halo window of input rows per row tile

    gh_tiles = _gh_row_tiles(h, th, kw)     # (nt, 5, th, kw)
    gwt = _gwt_full(w)                      # (5, w, w)
    x = x.astype(jnp.float32)
    y = y.astype(jnp.float32)

    # Per-step VMEM budget for the interleaved (per-sigma) working set, capped
    # per TPU generation (leave headroom for compiler scratch).
    worst_maps = 11                                   # sigmas 1/3 carry 10+1
    est_words = (2 * 2 * NUM_CH * h * w               # x, y (double-buffered)
                 + 2 * NUM_SIGMAS * th * kw           # Gh tile (x2 buffers)
                 + 2 * NUM_SIGMAS * w * w             # GwT (x2 buffers)
                 + 16 * kw * w                        # per-channel window maps
                 + worst_maps * w * (kw + 3 * th)     # slab+row+restack+col
                 + 16 * th * w)                       # group temps, PIcs, lM
    try:
        phys = int(pltpu.get_tpu_info().vmem_capacity_bytes)
    except Exception:
        phys = 64 * 2 ** 20                           # assume smallest (v7x)
    cap = min(phys * 7 // 8, 112 * 2 ** 20)
    vmem_limit = int(min(max(32 * 2 ** 20, 6 * est_words), cap))

    part = pl.pallas_call(
        _msssim_l1_kernel,
        out_shape=jax.ShapeDtypeStruct((b, nt, 1, 128), jnp.float32),
        grid_spec=pltpu.PrefetchScalarGridSpec(
            num_scalar_prefetch=0,
            grid=(b, nt),
            in_specs=[
                # Full image per batch element; constant along the row-tile
                # axis, so it is not re-DMA'd between consecutive tile steps.
                pl.BlockSpec((1, NUM_CH, h, w), lambda i, t: (i, 0, 0, 0)),
                pl.BlockSpec((1, NUM_CH, h, w), lambda i, t: (i, 0, 0, 0)),
                # Pre-sliced (TH, KW) halo window of the row band matrices.
                pl.BlockSpec((1, NUM_SIGMAS, th, kw),
                             lambda i, t: (t, 0, 0, 0)),
                # Constant column band matrices.  (When H == W and NT == 1
                # these equal the row matrices, but the row operand is tiled
                # to (TH, KW) windows, so a full (W, W) operand is kept.)
                # TODO(synk): single-buffer the constant operands via
                # pipeline_mode=pl.Buffered(1) once validated on the target
                # Mosaic version; constant index maps already avoid re-DMA,
                # only VMEM residency is left on the table.
                pl.BlockSpec((NUM_SIGMAS, w, w), lambda i, t: (0, 0, 0)),
            ],
            out_specs=pl.BlockSpec((1, 1, 1, 128), lambda i, t: (i, t, 0, 0)),
        ),
        compiler_params=pltpu.CompilerParams(
            dimension_semantics=("parallel", "parallel"),
            vmem_limit_bytes=vmem_limit),
    )(x, y, gh_tiles, gwt)

    # Partial tile sums -> global mean (== the reference's loss_mix.mean()).
    return jnp.sum(part[:, :, 0, 0]) / (b * h * w)


def _reference_loss(x, y):
    """Pure-JAX port of the PyTorch forward (for validation)."""
    g_masks = np.zeros((NUM_OUT, 1, FILTER_SIZE, FILTER_SIZE), np.float32)
    for idx, sigma in enumerate(GAUSSIAN_SIGMAS):
        g1 = _gauss_1d(FILTER_SIZE, sigma)
        g2 = np.outer(g1, g1)
        g_masks[3 * idx + 0, 0] = g2
        g_masks[3 * idx + 1, 0] = g2
        g_masks[3 * idx + 2, 0] = g2
    g_masks = jnp.asarray(g_masks)
    dn = ('NCHW', 'OIHW', 'NCHW')

    def conv(inp, wgt):
        return jax.lax.conv_general_dilated(
            inp, wgt, (1, 1), [(PAD, PAD), (PAD, PAD)],
            dimension_numbers=dn, feature_group_count=NUM_CH)

    mux, muy = conv(x, g_masks), conv(y, g_masks)
    mux2, muy2, muxy = mux * mux, muy * muy, mux * muy
    sigmax2 = conv(x * x, g_masks) - mux2
    sigmay2 = conv(y * y, g_masks) - muy2
    sigmaxy = conv(x * y, g_masks) - muxy
    l = (2 * muxy + C1) / (mux2 + muy2 + C1)
    cs = (2 * sigmaxy + C2) / (sigmax2 + sigmay2 + C2)
    lM = l[:, -1] * l[:, -2] * l[:, -3]
    PIcs = jnp.prod(cs, axis=1)
    loss_ms_ssim = 1 - lM * PIcs
    g_l1 = conv(jnp.abs(x - y), g_masks[-3:]).mean(1)
    loss_mix = ALPHA * loss_ms_ssim + (1 - ALPHA) * g_l1 / DATA_RANGE
    return jnp.mean(COMPENSATION * loss_mix)


if __name__ == "__main__":
    kx, ky, kx2, ky2 = jax.random.split(jax.random.PRNGKey(0), 4)

    # Test 1: module-consistent small shapes (single row tile per image).
    B, C, H, W = 2, 3, 16, 16
    x = jax.random.uniform(kx, (B, C, H, W), dtype=jnp.float32)
    y = jax.random.uniform(ky, (B, C, H, W), dtype=jnp.float32)
    loss = jax.block_until_ready(ms_ssim_l1_loss(x, y))
    ref = jax.block_until_ready(_reference_loss(x, y))
    np.testing.assert_allclose(np.asarray(loss), np.asarray(ref),
                               rtol=2e-3, atol=2e-3)

    # Test 2: exercise the row-tiled path (4 tiles, clamped halo windows).
    x2 = jax.random.uniform(kx2, (1, 3, 64, 64), dtype=jnp.float32)
    y2 = jax.random.uniform(ky2, (1, 3, 64, 64), dtype=jnp.float32)
    loss2 = jax.block_until_ready(ms_ssim_l1_loss(x2, y2, row_tile=16))
    ref2 = jax.block_until_ready(_reference_loss(x2, y2))
    np.testing.assert_allclose(np.asarray(loss2), np.asarray(ref2),
                               rtol=2e-3, atol=2e-3)

    print("KERNEL_OK")
</pallas_src>

<mosaic_0001>
module attributes {stable_mosaic.version = 11 : i64} {
  func.func @_msssim_l1_kernel(%arg0: i32, %arg1: i32, %arg2: memref<1x3x16x16xf32, #tpu.memory_space<vmem>>, %arg3: memref<1x3x16x16xf32, #tpu.memory_space<vmem>>, %arg4: memref<1x5x16x16xf32, #tpu.memory_space<vmem>>, %arg5: memref<5x16x16xf32, #tpu.memory_space<vmem>>, %arg6: memref<1x1x1x128xf32, #tpu.memory_space<vmem>>) attributes {dimension_semantics = [#tpu.dimension_semantics<parallel>, #tpu.dimension_semantics<parallel>], iteration_bounds = array<i64: 2, 1>, scalar_prefetch = 0 : i64, scratch_operands = 0 : i64, tpu.core_type = #tpu.core_type<tc>, window_params = [{transform_indices = @transform_0, window_bounds = array<i64: 1, 3, 16, 16>}, {transform_indices = @transform_1, window_bounds = array<i64: 1, 3, 16, 16>}, {transform_indices = @transform_2, window_bounds = array<i64: 1, 5, 16, 16>}, {pipeline_mode = #tpu.pipeline_mode<synchronous>, transform_indices = @transform_3, window_bounds = array<i64: 5, 16, 16>}, {transform_indices = @transform_4, window_bounds = array<i64: 1, 1, 1, 128>}]} {
    %c16_i32 = arith.constant 16 : i32
    %0 = arith.muli %arg1, %c16_i32 : i32
    %c16_i32_0 = arith.constant 16 : i32
    %1 = arith.subi %0, %c16_i32_0 : i32
    %c0_i32 = arith.constant 0 : i32
    %2 = arith.maxsi %1, %c0_i32 : i32
    %c0_i32_1 = arith.constant 0 : i32
    %3 = arith.minsi %2, %c0_i32_1 : i32
    %4 = tpu.assume_multiple %3, 8 : i32
    %c0 = arith.constant 0 : index
    %c0_2 = arith.constant 0 : index
    %5 = arith.index_cast %4 : i32 to index
    %c0_3 = arith.constant 0 : index
    %6 = vector.load %arg2[%c0, %c0_2, %5, %c0_3] : memref<1x3x16x16xf32, #tpu.memory_space<vmem>>, vector<1x1x16x16xf32>
    %7 = vector.shape_cast %6 : vector<1x1x16x16xf32> to vector<16x16xf32>
    %c0_4 = arith.constant 0 : index
    %c1 = arith.constant 1 : index
    %8 = arith.index_cast %4 : i32 to index
    %c0_5 = arith.constant 0 : index
    %9 = vector.load %arg2[%c0_4, %c1, %8, %c0_5] : memref<1x3x16x16xf32, #tpu.memory_space<vmem>>, vector<1x1x16x16xf32>
    %10 = vector.shape_cast %9 : vector<1x1x16x16xf32> to vector<16x16xf32>
    %c0_6 = arith.constant 0 : index
    %c2 = arith.constant 2 : index
    %11 = arith.index_cast %4 : i32 to index
    %c0_7 = arith.constant 0 : index
    %12 = vector.load %arg2[%c0_6, %c2, %11, %c0_7] : memref<1x3x16x16xf32, #tpu.memory_space<vmem>>, vector<1x1x16x16xf32>
    %13 = vector.shape_cast %12 : vector<1x1x16x16xf32> to vector<16x16xf32>
    %c0_8 = arith.constant 0 : index
    %c0_9 = arith.constant 0 : index
    %14 = arith.index_cast %4 : i32 to index
    %c0_10 = arith.constant 0 : index
    %15 = vector.load %arg3[%c0_8, %c0_9, %14, %c0_10] : memref<1x3x16x16xf32, #tpu.memory_space<vmem>>, vector<1x1x16x16xf32>
    %16 = vector.shape_cast %15 : vector<1x1x16x16xf32> to vector<16x16xf32>
    %c0_11 = arith.constant 0 : index
    %c1_12 = arith.constant 1 : index
    %17 = arith.index_cast %4 : i32 to index
    %c0_13 = arith.constant 0 : index
    %18 = vector.load %arg3[%c0_11, %c1_12, %17, %c0_13] : memref<1x3x16x16xf32, #tpu.memory_space<vmem>>, vector<1x1x16x16xf32>
    %19 = vector.shape_cast %18 : vector<1x1x16x16xf32> to vector<16x16xf32>
    %c0_14 = arith.constant 0 : index
    %c2_15 = arith.constant 2 : index
    %20 = arith.index_cast %4 : i32 to index
    %c0_16 = arith.constant 0 : index
    %21 = vector.load %arg3[%c0_14, %c2_15, %20, %c0_16] : memref<1x3x16x16xf32, #tpu.memory_space<vmem>>, vector<1x1x16x16xf32>
    %22 = vector.shape_cast %21 : vector<1x1x16x16xf32> to vector<16x16xf32>
    %23 = arith.mulf %7, %7 : vector<16x16xf32>
    %24 = arith.mulf %16, %16 : vector<16x16xf32>
    %25 = arith.mulf %7, %16 : vector<16x16xf32>
    %26 = arith.mulf %10, %10 : vector<16x16xf32>
    %27 = arith.mulf %19, %19 : vector<16x16xf32>
    %28 = arith.mulf %10, %19 : vector<16x16xf32>
    %29 = arith.mulf %13, %13 : vector<16x16xf32>
    %30 = arith.mulf %22, %22 : vector<16x16xf32>
    %31 = arith.mulf %13, %22 : vector<16x16xf32>
    %32 = arith.subf %7, %16 : vector<16x16xf32>
    %33 = math.absf %32 : vector<16x16xf32>
    %34 = arith.subf %10, %19 : vector<16x16xf32>
    %35 = math.absf %34 : vector<16x16xf32>
    %36 = arith.addf %33, %35 : vector<16x16xf32>
    %37 = arith.subf %13, %22 : vector<16x16xf32>
    %38 = math.absf %37 : vector<16x16xf32>
    %39 = arith.addf %36, %38 : vector<16x16xf32>
    %cst = arith.constant 0.333333343 : f32
    %40 = vector.broadcast %cst : f32 to vector<16x16xf32>
    %41 = arith.mulf %39, %40 : vector<16x16xf32>
    %42 = tpu.concatenate %7, %16, %23, %24, %25 in 1 : vector<16x16xf32>, vector<16x16xf32>, vector<16x16xf32>, vector<16x16xf32>, vector<16x16xf32> -> vector<16x80xf32>
    %c0_17 = arith.constant 0 : index
    %c0_18 = arith.constant 0 : index
    %c0_19 = arith.constant 0 : index
    %c0_20 = arith.constant 0 : index
    %43 = vector.load %arg4[%c0_17, %c0_18, %c0_19, %c0_20] : memref<1x5x16x16xf32, #tpu.memory_space<vmem>>, vector<1x1x16x16xf32>
    %44 = vector.shape_cast %43 : vector<1x1x16x16xf32> to vector<16x16xf32>
    %cst_21 = arith.constant dense<0.000000e+00> : vector<16x80xf32>
    %45 = tpu.matmul %44, %42, %cst_21 {dimension_numbers = #tpu.dot_dimension_numbers<[1], [0], [0], [1], [0, 0, 1, 1], [], []>} : vector<16x16xf32>, vector<16x80xf32>, vector<16x80xf32> -> vector<16x80xf32>
    %46 = vector.extract_strided_slice %45 {offsets = [0, 0], sizes = [16, 16], strides = [1, 1]} : vector<16x80xf32> to vector<16x16xf32>
    %47 = vector.extract_strided_slice %45 {offsets = [0, 16], sizes = [16, 16], strides = [1, 1]} : vector<16x80xf32> to vector<16x16xf32>
    %48 = vector.extract_strided_slice %45 {offsets = [0, 32], sizes = [16, 16], strides = [1, 1]} : vector<16x80xf32> to vector<16x16xf32>
    %49 = vector.extract_strided_slice %45 {offsets = [0, 48], sizes = [16, 16], strides = [1, 1]} : vector<16x80xf32> to vector<16x16xf32>
    %50 = vector.extract_strided_slice %45 {offsets = [0, 64], sizes = [16, 16], strides = [1, 1]} : vector<16x80xf32> to vector<16x16xf32>
    %51 = tpu.concatenate %46, %47, %48, %49, %50 in 0 : vector<16x16xf32>, vector<16x16xf32>, vector<16x16xf32>, vector<16x16xf32>, vector<16x16xf32> -> vector<80x16xf32>
    %c0_22 = arith.constant 0 : index
    %c0_23 = arith.constant 0 : index
    %c0_24 = arith.constant 0 : index
    %52 = vector.load %arg5[%c0_22, %c0_23, %c0_24] : memref<5x16x16xf32, #tpu.memory_space<vmem>>, vector<1x16x16xf32>
    %53 = vector.shape_cast %52 : vector<1x16x16xf32> to vector<16x16xf32>
    %cst_25 = arith.constant dense<0.000000e+00> : vector<80x16xf32>
    %54 = tpu.matmul %51, %53, %cst_25 {dimension_numbers = #tpu.dot_dimension_numbers<[1], [0], [0], [1], [0, 0, 1, 1], [], []>} : vector<80x16xf32>, vector<16x16xf32>, vector<80x16xf32> -> vector<80x16xf32>
    %55 = vector.extract_strided_slice %54 {offsets = [0, 0], sizes = [16, 16], strides = [1, 1]} : vector<80x16xf32> to vector<16x16xf32>
    %56 = vector.extract_strided_slice %54 {offsets = [16, 0], sizes = [16, 16], strides = [1, 1]} : vector<80x16xf32> to vector<16x16xf32>
    %57 = vector.extract_strided_slice %54 {offsets = [32, 0], sizes = [16, 16], strides = [1, 1]} : vector<80x16xf32> to vector<16x16xf32>
    %58 = vector.extract_strided_slice %54 {offsets = [48, 0], sizes = [16, 16], strides = [1, 1]} : vector<80x16xf32> to vector<16x16xf32>
    %59 = vector.extract_strided_slice %54 {offsets = [64, 0], sizes = [16, 16], strides = [1, 1]} : vector<80x16xf32> to vector<16x16xf32>
    %60 = arith.mulf %55, %55 : vector<16x16xf32>
    %61 = arith.mulf %56, %56 : vector<16x16xf32>
    %62 = arith.mulf %55, %56 : vector<16x16xf32>
    %63 = arith.subf %57, %60 : vector<16x16xf32>
    %64 = arith.subf %58, %61 : vector<16x16xf32>
    %65 = arith.subf %59, %62 : vector<16x16xf32>
    %cst_26 = arith.constant 2.000000e+00 : f32
    %66 = vector.broadcast %cst_26 : f32 to vector<16x16xf32>
    %67 = arith.mulf %66, %65 : vector<16x16xf32>
    %cst_27 = arith.constant 8.99999984E-4 : f32
    %68 = vector.broadcast %cst_27 : f32 to vector<16x16xf32>
    %69 = arith.addf %67, %68 : vector<16x16xf32>
    %70 = arith.addf %63, %64 : vector<16x16xf32>
    %cst_28 = arith.constant 8.99999984E-4 : f32
    %71 = vector.broadcast %cst_28 : f32 to vector<16x16xf32>
    %72 = arith.addf %70, %71 : vector<16x16xf32>
    %73 = tpu.reciprocal %72 : vector<16x16xf32> -> vector<16x16xf32>
    %74 = arith.mulf %69, %73 : vector<16x16xf32>
    %75 = arith.mulf %74, %74 : vector<16x16xf32>
    %76 = arith.mulf %75, %74 : vector<16x16xf32>
    %77 = tpu.concatenate %7, %16, %23, %24, %25, %10, %19, %26, %27, %28 in 1 : vector<16x16xf32>, vector<16x16xf32>, vector<16x16xf32>, vector<16x16xf32>, vector<16x16xf32>, vector<16x16xf32>, vector<16x16xf32>, vector<16x16xf32>, vector<16x16xf32>, vector<16x16xf32> -> vector<16x160xf32>
    %c0_29 = arith.constant 0 : index
    %c1_30 = arith.constant 1 : index
    %c0_31 = arith.constant 0 : index
    %c0_32 = arith.constant 0 : index
    %78 = vector.load %arg4[%c0_29, %c1_30, %c0_31, %c0_32] : memref<1x5x16x16xf32, #tpu.memory_space<vmem>>, vector<1x1x16x16xf32>
    %79 = vector.shape_cast %78 : vector<1x1x16x16xf32> to vector<16x16xf32>
    %cst_33 = arith.constant dense<0.000000e+00> : vector<16x160xf32>
    %80 = tpu.matmul %79, %77, %cst_33 {dimension_numbers = #tpu.dot_dimension_numbers<[1], [0], [0], [1], [0, 0, 1, 1], [], []>} : vector<16x16xf32>, vector<16x160xf32>, vector<16x160xf32> -> vector<16x160xf32>
    %81 = vector.extract_strided_slice %80 {offsets = [0, 0], sizes = [16, 16], strides = [1, 1]} : vector<16x160xf32> to vector<16x16xf32>
    %82 = vector.extract_strided_slice %80 {offsets = [0, 16], sizes = [16, 16], strides = [1, 1]} : vector<16x160xf32> to vector<16x16xf32>
    %83 = vector.extract_strided_slice %80 {offsets = [0, 32], sizes = [16, 16], strides = [1, 1]} : vector<16x160xf32> to vector<16x16xf32>
    %84 = vector.extract_strided_slice %80 {offsets = [0, 48], sizes = [16, 16], strides = [1, 1]} : vector<16x160xf32> to vector<16x16xf32>
    %85 = vector.extract_strided_slice %80 {offsets = [0, 64], sizes = [16, 16], strides = [1, 1]} : vector<16x160xf32> to vector<16x16xf32>
    %86 = vector.extract_strided_slice %80 {offsets = [0, 80], sizes = [16, 16], strides = [1, 1]} : vector<16x160xf32> to vector<16x16xf32>
    %87 = vector.extract_strided_slice %80 {offsets = [0, 96], sizes = [16, 16], strides = [1, 1]} : vector<16x160xf32> to vector<16x16xf32>
    %88 = vector.extract_strided_slice %80 {offsets = [0, 112], sizes = [16, 16], strides = [1, 1]} : vector<16x160xf32> to vector<16x16xf32>
    %89 = vector.extract_strided_slice %80 {offsets = [0, 128], sizes = [16, 16], strides = [1, 1]} : vector<16x160xf32> to vector<16x16xf32>
    %90 = vector.extract_strided_slice %80 {offsets = [0, 144], sizes = [16, 16], strides = [1, 1]} : vector<16x160xf32> to vector<16x16xf32>
    %91 = tpu.concatenate %81, %82, %83, %84, %85, %86, %87, %88, %89, %90 in 0 : vector<16x16xf32>, vector<16x16xf32>, vector<16x16xf32>, vector<16x16xf32>, vector<16x16xf32>, vector<16x16xf32>, vector<16x16xf32>, vector<16x16xf32>, vector<16x16xf32>, vector<16x16xf32> -> vector<160x16xf32>
    %c1_34 = arith.constant 1 : index
    %c0_35 = arith.constant 0 : index
    %c0_36 = arith.constant 0 : index
    %92 = vector.load %arg5[%c1_34, %c0_35, %c0_36] : memref<5x16x16xf32, #tpu.memory_space<vmem>>, vector<1x16x16xf32>
    %93 = vector.shape_cast %92 : vector<1x16x16xf32> to vector<16x16xf32>
    %cst_37 = arith.constant dense<0.000000e+00> : vector<160x16xf32>
    %94 = tpu.matmul %91, %93, %cst_37 {dimension_numbers = #tpu.dot_dimension_numbers<[1], [0], [0], [1], [0, 0, 1, 1], [], []>} : vector<160x16xf32>, vector<16x16xf32>, vector<160x16xf32> -> vector<160x16xf32>
    %95 = vector.extract_strided_slice %94 {offsets = [0, 0], sizes = [16, 16], strides = [1, 1]} : vector<160x16xf32> to vector<16x16xf32>
    %96 = vector.extract_strided_slice %94 {offsets = [16, 0], sizes = [16, 16], strides = [1, 1]} : vector<160x16xf32> to vector<16x16xf32>
    %97 = vector.extract_strided_slice %94 {offsets = [32, 0], sizes = [16, 16], strides = [1, 1]} : vector<160x16xf32> to vector<16x16xf32>
    %98 = vector.extract_strided_slice %94 {offsets = [48, 0], sizes = [16, 16], strides = [1, 1]} : vector<160x16xf32> to vector<16x16xf32>
    %99 = vector.extract_strided_slice %94 {offsets = [64, 0], sizes = [16, 16], strides = [1, 1]} : vector<160x16xf32> to vector<16x16xf32>
    %100 = arith.mulf %95, %95 : vector<16x16xf32>
    %101 = arith.mulf %96, %96 : vector<16x16xf32>
    %102 = arith.mulf %95, %96 : vector<16x16xf32>
    %103 = arith.subf %97, %100 : vector<16x16xf32>
    %104 = arith.subf %98, %101 : vector<16x16xf32>
    %105 = arith.subf %99, %102 : vector<16x16xf32>
    %cst_38 = arith.constant 2.000000e+00 : f32
    %106 = vector.broadcast %cst_38 : f32 to vector<16x16xf32>
    %107 = arith.mulf %106, %105 : vector<16x16xf32>
    %cst_39 = arith.constant 8.99999984E-4 : f32
    %108 = vector.broadcast %cst_39 : f32 to vector<16x16xf32>
    %109 = arith.addf %107, %108 : vector<16x16xf32>
    %110 = arith.addf %103, %104 : vector<16x16xf32>
    %cst_40 = arith.constant 8.99999984E-4 : f32
    %111 = vector.broadcast %cst_40 : f32 to vector<16x16xf32>
    %112 = arith.addf %110, %111 : vector<16x16xf32>
    %113 = tpu.reciprocal %112 : vector<16x16xf32> -> vector<16x16xf32>
    %114 = arith.mulf %109, %113 : vector<16x16xf32>
    %115 = arith.mulf %114, %114 : vector<16x16xf32>
    %116 = arith.mulf %76, %115 : vector<16x16xf32>
    %117 = vector.extract_strided_slice %94 {offsets = [80, 0], sizes = [16, 16], strides = [1, 1]} : vector<160x16xf32> to vector<16x16xf32>
    %118 = vector.extract_strided_slice %94 {offsets = [96, 0], sizes = [16, 16], strides = [1, 1]} : vector<160x16xf32> to vector<16x16xf32>
    %119 = vector.extract_strided_slice %94 {offsets = [112, 0], sizes = [16, 16], strides = [1, 1]} : vector<160x16xf32> to vector<16x16xf32>
    %120 = vector.extract_strided_slice %94 {offsets = [128, 0], sizes = [16, 16], strides = [1, 1]} : vector<160x16xf32> to vector<16x16xf32>
    %121 = vector.extract_strided_slice %94 {offsets = [144, 0], sizes = [16, 16], strides = [1, 1]} : vector<160x16xf32> to vector<16x16xf32>
    %122 = arith.mulf %117, %117 : vector<16x16xf32>
    %123 = arith.mulf %118, %118 : vector<16x16xf32>
    %124 = arith.mulf %117, %118 : vector<16x16xf32>
    %125 = arith.subf %119, %122 : vector<16x16xf32>
    %126 = arith.subf %120, %123 : vector<16x16xf32>
    %127 = arith.subf %121, %124 : vector<16x16xf32>
    %cst_41 = arith.constant 2.000000e+00 : f32
    %128 = vector.broadcast %cst_41 : f32 to vector<16x16xf32>
    %129 = arith.mulf %128, %127 : vector<16x16xf32>
    %cst_42 = arith.constant 8.99999984E-4 : f32
    %130 = vector.broadcast %cst_42 : f32 to vector<16x16xf32>
    %131 = arith.addf %129, %130 : vector<16x16xf32>
    %132 = arith.addf %125, %126 : vector<16x16xf32>
    %cst_43 = arith.constant 8.99999984E-4 : f32
    %133 = vector.broadcast %cst_43 : f32 to vector<16x16xf32>
    %134 = arith.addf %132, %133 : vector<16x16xf32>
    %135 = tpu.reciprocal %134 : vector<16x16xf32> -> vector<16x16xf32>
    %136 = arith.mulf %131, %135 : vector<16x16xf32>
    %137 = arith.mulf %116, %136 : vector<16x16xf32>
    %138 = tpu.concatenate %10, %19, %26, %27, %28 in 1 : vector<16x16xf32>, vector<16x16xf32>, vector<16x16xf32>, vector<16x16xf32>, vector<16x16xf32> -> vector<16x80xf32>
    %c0_44 = arith.constant 0 : index
    %c2_45 = arith.constant 2 : index
    %c0_46 = arith.constant 0 : index
    %c0_47 = arith.constant 0 : index
    %139 = vector.load %arg4[%c0_44, %c2_45, %c0_46, %c0_47] : memref<1x5x16x16xf32, #tpu.memory_space<vmem>>, vector<1x1x16x16xf32>
    %140 = vector.shape_cast %139 : vector<1x1x16x16xf32> to vector<16x16xf32>
    %cst_48 = arith.constant dense<0.000000e+00> : vector<16x80xf32>
    %141 = tpu.matmul %140, %138, %cst_48 {dimension_numbers = #tpu.dot_dimension_numbers<[1], [0], [0], [1], [0, 0, 1, 1], [], []>} : vector<16x16xf32>, vector<16x80xf32>, vector<16x80xf32> -> vector<16x80xf32>
    %142 = vector.extract_strided_slice %141 {offsets = [0, 0], sizes = [16, 16], strides = [1, 1]} : vector<16x80xf32> to vector<16x16xf32>
    %143 = vector.extract_strided_slice %141 {offsets = [0, 16], sizes = [16, 16], strides = [1, 1]} : vector<16x80xf32> to vector<16x16xf32>
    %144 = vector.extract_strided_slice %141 {offsets = [0, 32], sizes = [16, 16], strides = [1, 1]} : vector<16x80xf32> to vector<16x16xf32>
    %145 = vector.extract_strided_slice %141 {offsets = [0, 48], sizes = [16, 16], strides = [1, 1]} : vector<16x80xf32> to vector<16x16xf32>
    %146 = vector.extract_strided_slice %141 {offsets = [0, 64], sizes = [16, 16], strides = [1, 1]} : vector<16x80xf32> to vector<16x16xf32>
    %147 = tpu.concatenate %142, %143, %144, %145, %146 in 0 : vector<16x16xf32>, vector<16x16xf32>, vector<16x16xf32>, vector<16x16xf32>, vector<16x16xf32> -> vector<80x16xf32>
    %c2_49 = arith.constant 2 : index
    %c0_50 = arith.constant 0 : index
    %c0_51 = arith.constant 0 : index
    %148 = vector.load %arg5[%c2_49, %c0_50, %c0_51] : memref<5x16x16xf32, #tpu.memory_space<vmem>>, vector<1x16x16xf32>
    %149 = vector.shape_cast %148 : vector<1x16x16xf32> to vector<16x16xf32>
    %cst_52 = arith.constant dense<0.000000e+00> : vector<80x16xf32>
    %150 = tpu.matmul %147, %149, %cst_52 {dimension_numbers = #tpu.dot_dimension_numbers<[1], [0], [0], [1], [0, 0, 1, 1], [], []>} : vector<80x16xf32>, vector<16x16xf32>, vector<80x16xf32> -> vector<80x16xf32>
    %151 = vector.extract_strided_slice %150 {offsets = [0, 0], sizes = [16, 16], strides = [1, 1]} : vector<80x16xf32> to vector<16x16xf32>
    %152 = vector.extract_strided_slice %150 {offsets = [16, 0], sizes = [16, 16], strides = [1, 1]} : vector<80x16xf32> to vector<16x16xf32>
    %153 = vector.extract_strided_slice %150 {offsets = [32, 0], sizes = [16, 16], strides = [1, 1]} : vector<80x16xf32> to vector<16x16xf32>
    %154 = vector.extract_strided_slice %150 {offsets = [48, 0], sizes = [16, 16], strides = [1, 1]} : vector<80x16xf32> to vector<16x16xf32>
    %155 = vector.extract_strided_slice %150 {offsets = [64, 0], sizes = [16, 16], strides = [1, 1]} : vector<80x16xf32> to vector<16x16xf32>
    %156 = arith.mulf %151, %151 : vector<16x16xf32>
    %157 = arith.mulf %152, %152 : vector<16x16xf32>
    %158 = arith.mulf %151, %152 : vector<16x16xf32>
    %159 = arith.subf %153, %156 : vector<16x16xf32>
    %160 = arith.subf %154, %157 : vector<16x16xf32>
    %161 = arith.subf %155, %158 : vector<16x16xf32>
    %cst_53 = arith.constant 2.000000e+00 : f32
    %162 = vector.broadcast %cst_53 : f32 to vector<16x16xf32>
    %163 = arith.mulf %162, %161 : vector<16x16xf32>
    %cst_54 = arith.constant 8.99999984E-4 : f32
    %164 = vector.broadcast %cst_54 : f32 to vector<16x16xf32>
    %165 = arith.addf %163, %164 : vector<16x16xf32>
    %166 = arith.addf %159, %160 : vector<16x16xf32>
    %cst_55 = arith.constant 8.99999984E-4 : f32
    %167 = vector.broadcast %cst_55 : f32 to vector<16x16xf32>
    %168 = arith.addf %166, %167 : vector<16x16xf32>
    %169 = tpu.reciprocal %168 : vector<16x16xf32> -> vector<16x16xf32>
    %170 = arith.mulf %165, %169 : vector<16x16xf32>
    %171 = arith.mulf %170, %170 : vector<16x16xf32>
    %172 = arith.mulf %171, %170 : vector<16x16xf32>
    %173 = arith.mulf %137, %172 : vector<16x16xf32>
    %174 = tpu.concatenate %10, %19, %26, %27, %28, %13, %22, %29, %30, %31 in 1 : vector<16x16xf32>, vector<16x16xf32>, vector<16x16xf32>, vector<16x16xf32>, vector<16x16xf32>, vector<16x16xf32>, vector<16x16xf32>, vector<16x16xf32>, vector<16x16xf32>, vector<16x16xf32> -> vector<16x160xf32>
    %c0_56 = arith.constant 0 : index
    %c3 = arith.constant 3 : index
    %c0_57 = arith.constant 0 : index
    %c0_58 = arith.constant 0 : index
    %175 = vector.load %arg4[%c0_56, %c3, %c0_57, %c0_58] : memref<1x5x16x16xf32, #tpu.memory_space<vmem>>, vector<1x1x16x16xf32>
    %176 = vector.shape_cast %175 : vector<1x1x16x16xf32> to vector<16x16xf32>
    %cst_59 = arith.constant dense<0.000000e+00> : vector<16x160xf32>
    %177 = tpu.matmul %176, %174, %cst_59 {dimension_numbers = #tpu.dot_dimension_numbers<[1], [0], [0], [1], [0, 0, 1, 1], [], []>} : vector<16x16xf32>, vector<16x160xf32>, vector<16x160xf32> -> vector<16x160xf32>
    %178 = vector.extract_strided_slice %177 {offsets = [0, 0], sizes = [16, 16], strides = [1, 1]} : vector<16x160xf32> to vector<16x16xf32>
    %179 = vector.extract_strided_slice %177 {offsets = [0, 16], sizes = [16, 16], strides = [1, 1]} : vector<16x160xf32> to vector<16x16xf32>
    %180 = vector.extract_strided_slice %177 {offsets = [0, 32], sizes = [16, 16], strides = [1, 1]} : vector<16x160xf32> to vector<16x16xf32>
    %181 = vector.extract_strided_slice %177 {offsets = [0, 48], sizes = [16, 16], strides = [1, 1]} : vector<16x160xf32> to vector<16x16xf32>
    %182 = vector.extract_strided_slice %177 {offsets = [0, 64], sizes = [16, 16], strides = [1, 1]} : vector<16x160xf32> to vector<16x16xf32>
    %183 = vector.extract_strided_slice %177 {offsets = [0, 80], sizes = [16, 16], strides = [1, 1]} : vector<16x160xf32> to vector<16x16xf32>
    %184 = vector.extract_strided_slice %177 {offsets = [0, 96], sizes = [16, 16], strides = [1, 1]} : vector<16x160xf32> to vector<16x16xf32>
    %185 = vector.extract_strided_slice %177 {offsets = [0, 112], sizes = [16, 16], strides = [1, 1]} : vector<16x160xf32> to vector<16x16xf32>
    %186 = vector.extract_strided_slice %177 {offsets = [0, 128], sizes = [16, 16], strides = [1, 1]} : vector<16x160xf32> to vector<16x16xf32>
    %187 = vector.extract_strided_slice %177 {offsets = [0, 144], sizes = [16, 16], strides = [1, 1]} : vector<16x160xf32> to vector<16x16xf32>
    %188 = tpu.concatenate %178, %179, %180, %181, %182, %183, %184, %185, %186, %187 in 0 : vector<16x16xf32>, vector<16x16xf32>, vector<16x16xf32>, vector<16x16xf32>, vector<16x16xf32>, vector<16x16xf32>, vector<16x16xf32>, vector<16x16xf32>, vector<16x16xf32>, vector<16x16xf32> -> vector<160x16xf32>
    %c3_60 = arith.constant 3 : index
    %c0_61 = arith.constant 0 : index
    %c0_62 = arith.constant 0 : index
    %189 = vector.load %arg5[%c3_60, %c0_61, %c0_62] : memref<5x16x16xf32, #tpu.memory_space<vmem>>, vector<1x16x16xf32>
    %190 = vector.shape_cast %189 : vector<1x16x16xf32> to vector<16x16xf32>
    %cst_63 = arith.constant dense<0.000000e+00> : vector<160x16xf32>
    %191 = tpu.matmul %188, %190, %cst_63 {dimension_numbers = #tpu.dot_dimension_numbers<[1], [0], [0], [1], [0, 0, 1, 1], [], []>} : vector<160x16xf32>, vector<16x16xf32>, vector<160x16xf32> -> vector<160x16xf32>
    %192 = vector.extract_strided_slice %191 {offsets = [0, 0], sizes = [16, 16], strides = [1, 1]} : vector<160x16xf32> to vector<16x16xf32>
    %193 = vector.extract_strided_slice %191 {offsets = [16, 0], sizes = [16, 16], strides = [1, 1]} : vector<160x16xf32> to vector<16x16xf32>
    %194 = vector.extract_strided_slice %191 {offsets = [32, 0], sizes = [16, 16], strides = [1, 1]} : vector<160x16xf32> to vector<16x16xf32>
    %195 = vector.extract_strided_slice %191 {offsets = [48, 0], sizes = [16, 16], strides = [1, 1]} : vector<160x16xf32> to vector<16x16xf32>
    %196 = vector.extract_strided_slice %191 {offsets = [64, 0], sizes = [16, 16], strides = [1, 1]} : vector<160x16xf32> to vector<16x16xf32>
    %197 = arith.mulf %192, %192 : vector<16x16xf32>
    %198 = arith.mulf %193, %193 : vector<16x16xf32>
    %199 = arith.mulf %192, %193 : vector<16x16xf32>
    %200 = arith.subf %194, %197 : vector<16x16xf32>
    %201 = arith.subf %195, %198 : vector<16x16xf32>
    %202 = arith.subf %196, %199 : vector<16x16xf32>
    %cst_64 = arith.constant 2.000000e+00 : f32
    %203 = vector.broadcast %cst_64 : f32 to vector<16x16xf32>
    %204 = arith.mulf %203, %202 : vector<16x16xf32>
    %cst_65 = arith.constant 8.99999984E-4 : f32
    %205 = vector.broadcast %cst_65 : f32 to vector<16x16xf32>
    %206 = arith.addf %204, %205 : vector<16x16xf32>
    %207 = arith.addf %200, %201 : vector<16x16xf32>
    %cst_66 = arith.constant 8.99999984E-4 : f32
    %208 = vector.broadcast %cst_66 : f32 to vector<16x16xf32>
    %209 = arith.addf %207, %208 : vector<16x16xf32>
    %210 = tpu.reciprocal %209 : vector<16x16xf32> -> vector<16x16xf32>
    %211 = arith.mulf %206, %210 : vector<16x16xf32>
    %212 = arith.mulf %173, %211 : vector<16x16xf32>
    %213 = vector.extract_strided_slice %191 {offsets = [80, 0], sizes = [16, 16], strides = [1, 1]} : vector<160x16xf32> to vector<16x16xf32>
    %214 = vector.extract_strided_slice %191 {offsets = [96, 0], sizes = [16, 16], strides = [1, 1]} : vector<160x16xf32> to vector<16x16xf32>
    %215 = vector.extract_strided_slice %191 {offsets = [112, 0], sizes = [16, 16], strides = [1, 1]} : vector<160x16xf32> to vector<16x16xf32>
    %216 = vector.extract_strided_slice %191 {offsets = [128, 0], sizes = [16, 16], strides = [1, 1]} : vector<160x16xf32> to vector<16x16xf32>
    %217 = vector.extract_strided_slice %191 {offsets = [144, 0], sizes = [16, 16], strides = [1, 1]} : vector<160x16xf32> to vector<16x16xf32>
    %218 = arith.mulf %213, %213 : vector<16x16xf32>
    %219 = arith.mulf %214, %214 : vector<16x16xf32>
    %220 = arith.mulf %213, %214 : vector<16x16xf32>
    %221 = arith.subf %215, %218 : vector<16x16xf32>
    %222 = arith.subf %216, %219 : vector<16x16xf32>
    %223 = arith.subf %217, %220 : vector<16x16xf32>
    %cst_67 = arith.constant 2.000000e+00 : f32
    %224 = vector.broadcast %cst_67 : f32 to vector<16x16xf32>
    %225 = arith.mulf %224, %223 : vector<16x16xf32>
    %cst_68 = arith.constant 8.99999984E-4 : f32
    %226 = vector.broadcast %cst_68 : f32 to vector<16x16xf32>
    %227 = arith.addf %225, %226 : vector<16x16xf32>
    %228 = arith.addf %221, %222 : vector<16x16xf32>
    %cst_69 = arith.constant 8.99999984E-4 : f32
    %229 = vector.broadcast %cst_69 : f32 to vector<16x16xf32>
    %230 = arith.addf %228, %229 : vector<16x16xf32>
    %231 = tpu.reciprocal %230 : vector<16x16xf32> -> vector<16x16xf32>
    %232 = arith.mulf %227, %231 : vector<16x16xf32>
    %233 = arith.mulf %232, %232 : vector<16x16xf32>
    %234 = arith.mulf %212, %233 : vector<16x16xf32>
    %235 = tpu.concatenate %13, %22, %29, %30, %31, %41 in 1 : vector<16x16xf32>, vector<16x16xf32>, vector<16x16xf32>, vector<16x16xf32>, vector<16x16xf32>, vector<16x16xf32> -> vector<16x96xf32>
    %c0_70 = arith.constant 0 : index
    %c4 = arith.constant 4 : index
    %c0_71 = arith.constant 0 : index
    %c0_72 = arith.constant 0 : index
    %236 = vector.load %arg4[%c0_70, %c4, %c0_71, %c0_72] : memref<1x5x16x16xf32, #tpu.memory_space<vmem>>, vector<1x1x16x16xf32>
    %237 = vector.shape_cast %236 : vector<1x1x16x16xf32> to vector<16x16xf32>
    %cst_73 = arith.constant dense<0.000000e+00> : vector<16x96xf32>
    %238 = tpu.matmul %237, %235, %cst_73 {dimension_numbers = #tpu.dot_dimension_numbers<[1], [0], [0], [1], [0, 0, 1, 1], [], []>} : vector<16x16xf32>, vector<16x96xf32>, vector<16x96xf32> -> vector<16x96xf32>
    %239 = vector.extract_strided_slice %238 {offsets = [0, 0], sizes = [16, 16], strides = [1, 1]} : vector<16x96xf32> to vector<16x16xf32>
    %240 = vector.extract_strided_slice %238 {offsets = [0, 16], sizes = [16, 16], strides = [1, 1]} : vector<16x96xf32> to vector<16x16xf32>
    %241 = vector.extract_strided_slice %238 {offsets = [0, 32], sizes = [16, 16], strides = [1, 1]} : vector<16x96xf32> to vector<16x16xf32>
    %242 = vector.extract_strided_slice %238 {offsets = [0, 48], sizes = [16, 16], strides = [1, 1]} : vector<16x96xf32> to vector<16x16xf32>
    %243 = vector.extract_strided_slice %238 {offsets = [0, 64], sizes = [16, 16], strides = [1, 1]} : vector<16x96xf32> to vector<16x16xf32>
    %244 = vector.extract_strided_slice %238 {offsets = [0, 80], sizes = [16, 16], strides = [1, 1]} : vector<16x96xf32> to vector<16x16xf32>
    %245 = tpu.concatenate %239, %240, %241, %242, %243, %244 in 0 : vector<16x16xf32>, vector<16x16xf32>, vector<16x16xf32>, vector<16x16xf32>, vector<16x16xf32>, vector<16x16xf32> -> vector<96x16xf32>
    %c4_74 = arith.constant 4 : index
    %c0_75 = arith.constant 0 : index
    %c0_76 = arith.constant 0 : index
    %246 = vector.load %arg5[%c4_74, %c0_75, %c0_76] : memref<5x16x16xf32, #tpu.memory_space<vmem>>, vector<1x16x16xf32>
    %247 = vector.shape_cast %246 : vector<1x16x16xf32> to vector<16x16xf32>
    %cst_77 = arith.constant dense<0.000000e+00> : vector<96x16xf32>
    %248 = tpu.matmul %245, %247, %cst_77 {dimension_numbers = #tpu.dot_dimension_numbers<[1], [0], [0], [1], [0, 0, 1, 1], [], []>} : vector<96x16xf32>, vector<16x16xf32>, vector<96x16xf32> -> vector<96x16xf32>
    %249 = vector.extract_strided_slice %248 {offsets = [0, 0], sizes = [16, 16], strides = [1, 1]} : vector<96x16xf32> to vector<16x16xf32>
    %250 = vector.extract_strided_slice %248 {offsets = [16, 0], sizes = [16, 16], strides = [1, 1]} : vector<96x16xf32> to vector<16x16xf32>
    %251 = vector.extract_strided_slice %248 {offsets = [32, 0], sizes = [16, 16], strides = [1, 1]} : vector<96x16xf32> to vector<16x16xf32>
    %252 = vector.extract_strided_slice %248 {offsets = [48, 0], sizes = [16, 16], strides = [1, 1]} : vector<96x16xf32> to vector<16x16xf32>
    %253 = vector.extract_strided_slice %248 {offsets = [64, 0], sizes = [16, 16], strides = [1, 1]} : vector<96x16xf32> to vector<16x16xf32>
    %254 = arith.mulf %249, %249 : vector<16x16xf32>
    %255 = arith.mulf %250, %250 : vector<16x16xf32>
    %256 = arith.mulf %249, %250 : vector<16x16xf32>
    %257 = arith.subf %251, %254 : vector<16x16xf32>
    %258 = arith.subf %252, %255 : vector<16x16xf32>
    %259 = arith.subf %253, %256 : vector<16x16xf32>
    %cst_78 = arith.constant 2.000000e+00 : f32
    %260 = vector.broadcast %cst_78 : f32 to vector<16x16xf32>
    %261 = arith.mulf %260, %259 : vector<16x16xf32>
    %cst_79 = arith.constant 8.99999984E-4 : f32
    %262 = vector.broadcast %cst_79 : f32 to vector<16x16xf32>
    %263 = arith.addf %261, %262 : vector<16x16xf32>
    %264 = arith.addf %257, %258 : vector<16x16xf32>
    %cst_80 = arith.constant 8.99999984E-4 : f32
    %265 = vector.broadcast %cst_80 : f32 to vector<16x16xf32>
    %266 = arith.addf %264, %265 : vector<16x16xf32>
    %267 = tpu.reciprocal %266 : vector<16x16xf32> -> vector<16x16xf32>
    %268 = arith.mulf %263, %267 : vector<16x16xf32>
    %269 = arith.mulf %268, %268 : vector<16x16xf32>
    %270 = arith.mulf %269, %268 : vector<16x16xf32>
    %271 = arith.mulf %234, %270 : vector<16x16xf32>
    %cst_81 = arith.constant 2.000000e+00 : f32
    %272 = vector.broadcast %cst_81 : f32 to vector<16x16xf32>
    %273 = arith.mulf %272, %256 : vector<16x16xf32>
    %cst_82 = arith.constant 9.99999974E-5 : f32
    %274 = vector.broadcast %cst_82 : f32 to vector<16x16xf32>
    %275 = arith.addf %273, %274 : vector<16x16xf32>
    %276 = arith.addf %254, %255 : vector<16x16xf32>
    %cst_83 = arith.constant 9.99999974E-5 : f32
    %277 = vector.broadcast %cst_83 : f32 to vector<16x16xf32>
    %278 = arith.addf %276, %277 : vector<16x16xf32>
    %279 = tpu.reciprocal %278 : vector<16x16xf32> -> vector<16x16xf32>
    %280 = arith.mulf %275, %279 : vector<16x16xf32>
    %281 = arith.mulf %280, %280 : vector<16x16xf32>
    %282 = arith.mulf %281, %280 : vector<16x16xf32>
    %283 = vector.extract_strided_slice %248 {offsets = [80, 0], sizes = [16, 16], strides = [1, 1]} : vector<96x16xf32> to vector<16x16xf32>
    %284 = arith.mulf %282, %271 : vector<16x16xf32>
    %cst_84 = arith.constant 1.000000e+00 : f32
    %285 = vector.broadcast %cst_84 : f32 to vector<16x16xf32>
    %286 = arith.subf %285, %284 : vector<16x16xf32>
    %cst_85 = arith.constant 2.500000e-02 : f32
    %287 = vector.broadcast %cst_85 : f32 to vector<16x16xf32>
    %288 = arith.mulf %287, %286 : vector<16x16xf32>
    %cst_86 = arith.constant 9.750000e-01 : f32
    %289 = vector.broadcast %cst_86 : f32 to vector<16x16xf32>
    %290 = arith.mulf %289, %283 : vector<16x16xf32>
    %291 = arith.addf %288, %290 : vector<16x16xf32>
    %292 = vector.shape_cast %291 : vector<16x16xf32> to vector<1x16x16xf32>
    %cst_87 = arith.constant dense<0.000000e+00> : vector<1xf32>
    %293 = vector.multi_reduction <add>, %292, %cst_87 [1, 2] : vector<1x16x16xf32> to vector<1xf32>
    %294 = vector.shape_cast %293 : vector<1xf32> to vector<1x1x1xf32>
    %295 = vector.extract %294[0, 0, 0] : f32 from vector<1x1x1xf32>
    %cst_88 = arith.constant 2.000000e+02 : f32
    %296 = arith.mulf %cst_88, %295 : f32
    %297 = vector.broadcast %296 : f32 to vector<1x128xf32>
    %c0_89 = arith.constant 0 : index
    %c0_90 = arith.constant 0 : index
    %c0_91 = arith.constant 0 : index
    %c0_92 = arith.constant 0 : index
    %298 = vector.load %arg6[%c0_89, %c0_90, %c0_91, %c0_92] : memref<1x1x1x128xf32, #tpu.memory_space<vmem>>, vector<1x1x1x128xf32>
    %299 = vector.shape_cast %298 : vector<1x1x1x128xf32> to vector<1x128xf32>
    %300 = vector.shape_cast %297 : vector<1x128xf32> to vector<1x1x1x128xf32>
    tpu.vector_store %arg6[%c0_89, %c0_90, %c0_91, %c0_92], %300 {strides = array<i32>} : memref<1x1x1x128xf32, #tpu.memory_space<vmem>>, vector<1x1x1x128xf32>,
    return
  }
  func.func @transform_0(%arg0: i32, %arg1: i32) -> (i32, i32, i32, i32) {
    %c0_i32 = arith.constant 0 : i32
    %c0_i32_0 = arith.constant 0 : i32
    %c0_i32_1 = arith.constant 0 : i32
    %c0_i32_2 = arith.constant 0 : i32
    return %arg0, %c0_i32, %c0_i32_0, %c0_i32_1 : i32, i32, i32, i32
  }
  func.func @transform_1(%arg0: i32, %arg1: i32) -> (i32, i32, i32, i32) {
    %c0_i32 = arith.constant 0 : i32
    %c0_i32_0 = arith.constant 0 : i32
    %c0_i32_1 = arith.constant 0 : i32
    %c0_i32_2 = arith.constant 0 : i32
    return %arg0, %c0_i32, %c0_i32_0, %c0_i32_1 : i32, i32, i32, i32
  }
  func.func @transform_2(%arg0: i32, %arg1: i32) -> (i32, i32, i32, i32) {
    %c0_i32 = arith.constant 0 : i32
    %c0_i32_0 = arith.constant 0 : i32
    %c0_i32_1 = arith.constant 0 : i32
    %c0_i32_2 = arith.constant 0 : i32
    return %arg1, %c0_i32, %c0_i32_0, %c0_i32_1 : i32, i32, i32, i32
  }
  func.func @transform_3(%arg0: i32, %arg1: i32) -> (i32, i32, i32) {
    %c0_i32 = arith.constant 0 : i32
    %c0_i32_0 = arith.constant 0 : i32
    %c0_i32_1 = arith.constant 0 : i32
    %c0_i32_2 = arith.constant 0 : i32
    return %c0_i32, %c0_i32_0, %c0_i32_1 : i32, i32, i32
  }
  func.func @transform_4(%arg0: i32, %arg1: i32) -> (i32, i32, i32, i32) {
    %c0_i32 = arith.constant 0 : i32
    %c0_i32_0 = arith.constant 0 : i32
    %c0_i32_1 = arith.constant 0 : i32
    return %arg0, %arg1, %c0_i32, %c0_i32_0 : i32, i32, i32, i32
  }
}

</mosaic_0001>

<bundles_post_ra>
// kernel: tpu_custom_call.1
= control target key start
LH: loop header
LB: loop body
LE: loop exit
PB: predicated region body
PF: predicated region fallthrough
CT: control target
= control target key end

     0   :  { %s3513_s0 = inlined_call_operand.hbm [shape: f32[2,3,16,16], index: 0, kind: input, shape index: {}]   ;;  %s3514_s1 = inlined_call_operand.hbm [shape: f32[2,3,16,16], index: 1, kind: input, shape index: {}]   ;;  %s3515_s2 = inlined_call_operand.hbm [shape: f32[1,5,16,16], index: 2, kind: input, shape index: {}]   ;;  %s3516_s3 = inlined_call_operand.hbm [shape: f32[5,16,16], index: 3, kind: input, shape index: {}]   ;;  %s3517_s4 = inlined_call_operand.hbm [shape: f32[2,1,1,128], index: 4, kind: output, shape index: {}]  }
   0x1   :  { %3525 = sst [smem:[#allocation20_spill]] %s3515_s2 }
   0x2   :  { %3526 = sst [smem:[#allocation21_spill]] %s3516_s3 }
   0x3   :  { %9 = vsyncpa [#allocation3], 0 }
   0x4   :  { %11 = vsyncpa [#allocation3 + $0x1], 0 }
   0x5   :  { %12 = vsyncpa [#allocation6], 0 }
   0x6   :  { %14 = vsyncpa [#allocation6 + $0x1], 0 }
   0x7   :  { %15 = vsyncpa [#allocation9], 0 }
   0x8   :  { %16 = vsyncpa [#allocation4], 0 }
   0x9   :  { %18 = vsyncpa [#allocation4 + $0x1], 0  ;;  %s2569_s15 = smov 0   ;;  %s2571_s16 = smov 0  }
   0xa   :  { %s2573_s17 = smov 0   ;;  %s2575_s18 = smov 0  }
   0xb   :  { %s2577_s19 = smov 0   ;;  %s2579_s20 = smov 0  }
   0xc LB: > { %3527 = sst [smem:[#allocation16_spill]] %s2519_s17  ;;  %s2600_s21 = sadd.s32 4294967295, %s2531_s20   ;;  %s2531_s20 = sphi %s2579_s20, %s24_s20   ;;  %s2527_s19 = sphi %s2577_s19, %s3559_s19   ;;  %s2523_s18 = sphi %s2575_s18, %s3558_s18   ;;  %s2519_s17 = sphi %s2573_s17, %s3557_s17   ;;  %s2515_s16 = sphi %s2571_s16, %s3561_s16   ;;  %s2511_s15 = sphi %s2569_s15, %s3560_s15  }
   0xd   : > { %3528 = sst [smem:[#allocation17_spill]] %s2527_s19  ;;  %s1964_s22 = sadd.s32 4294967294, %s2531_s20  }
   0xe   : > { %p56_p0 = scmp.ne.s32.totalorder %s2515_s16, %s2511_s15  ;;  %p57_p1 = scmp.eq.s32.totalorder %s2600_s21, 0 }
   0xf   : > { %p155_p2 = scmp.eq.s32.totalorder %s2600_s21, 1  ;;  %p161_p3 = scmp.eq.s32.totalorder %s1964_s22, 1 }
  0x10   : > { %p2609_p4 = por %p57_p1, %p56_p0  ;;  %p1965_p5 = scmp.ge.s32.totalorder %s2531_s20, 1 }
  0x11   : > { %p2614_p6 = por %p161_p3, %p56_p0  ;;  %p168_p7 = scmp.lt.s32.totalorder %s2531_s20, 3 }
  0x12   : > { %s3531_s2 = sld [smem:[#allocation20_spill]]  ;;  %s2533_s29 = smov [#allocation7]  }
  0x13   : > { %p2622_p8 = pnand %p1965_p5, %p168_p7  ;;  %s184_s30 = sshll.u32 %s2533_s29, 4  ;;  %s185_s30 = int_to_ptr.vmem [resolvable:$true] %s184_s30 }
  0x14   : > { %p1968_p11 = scmp.ge.s32.totalorder %s2531_s20, 2  ;;  %s3533_s3 = sld [smem:[#allocation21_spill]] }
  0x15   : > { %p2097_p9 = pneg %p2622_p8  ;;  %s3518_s8 = smov 128  }
  0x16   : > { %s3520_s9 = smov 8   ;;  %s2536_s10 = smov [#allocation8]  }
  0x17   : > { %p2098_p10 = pnand %p2097_p9, %p57_p1  ;;  %s198_s11 = sshll.u32 %s2536_s10, 4  ;;  %s199_s11 = int_to_ptr.vmem [resolvable:$true] %s198_s11 }
  0x18   : > { %s182_s27 = sshll.u32 %s3531_s2, 4  ;;  %s36_s12 = sadd.s32 1, %s2527_s19  ;;  %s183_s27 = int_to_ptr.hbm [resolvable:$true] %s182_s27 }
  0x19   : > { %2100 = dma.hbm_to_vmem [thread:$0]  (!%p2098_p10), %s183_s27, 1280, %s185_s30, [#allocation6], %s3518_s8, %s3518_s8, %s3520_s9  }
  0x1a   : > { %s196_s7 = sshll.u32 %s3533_s3, 4  ;;  %s43_s13 = sadd.s32 1, %s2519_s17  ;;  %s197_s7 = int_to_ptr.hbm [resolvable:$true] %s196_s7 }
  0x1b   : > { %2103 = dma.hbm_to_vmem [thread:$0]  (!%p2098_p10), %s197_s7, 1280, %s199_s11, [#allocation9], %s3518_s8, %s3518_s8, %s3520_s9  }
  0x1c   : > { %p38_p12 = scmp.ge.s32.totalorder %s36_s12, 2  ;;  %p50_p13 = scmp.ne.s32.totalorder %s2519_s17, %s2515_s16 }
  0x1d   : > { %p51_p0 = scmp.eq.s32.totalorder %s2531_s20, 0  ;;  %p2117_p3 = scmp.lt.s32.totalorder %s2531_s20, 2 }
  0x1e   : > { %s3563_s12 = smov (%p38_p12, %s36_s12), 0  ;;  %p2650_p7 = por %p155_p2, %p50_p13 }
  0x1f   : > { %3534 = sst [smem:[#allocation18_spill]] %s3563_s12  ;;  %p52_p5 = por %p51_p0, %p50_p13 }
  0x20   : > { %s40_s22 = ssub.s32 %s2527_s19, %s3563_s12  ;;  %s212_s25 = sand.u32 1, %s2519_s17  }
  0x21   : > { %p41_p9 = scmp.eq.s32.totalorder %s40_s22, 0  ;;  %s2076_s26 = smul.u32 48, %s212_s25 }
  0x22   : > { %p2657_p10 = pnand %p2117_p3, %p52_p5  ;;  %s2077_s30 = smul.u32 48, %s2527_s19 }
  0x23   : > { %s2662_s29 = scalar_select %p41_p9, %s2519_s17, %s43_s13  }
  0x24   : > { %s216_s5 = scalar_lea.vmem [#allocation2], %s2076_s26  ;;  %s221_s11 = scalar_lea.hbm %s3513_s0, %s2077_s30 }
  0x25   : > { %3537 = sst [smem:[#allocation19_spill]] %s2662_s29  ;;  %s224_s6 = sshll.u32 %s216_s5, 4  ;;  %s225_s6 = int_to_ptr.vmem [resolvable:$true] %s224_s6 }
  0x26   : > { %s222_s8 = sshll.u32 %s221_s11, 4  ;;  %s234_s9 = sand.u32 1, %s2531_s20   ;;  %s223_s8 = int_to_ptr.hbm [resolvable:$true] %s222_s8 }
  0x27   : > { %s213_s22 = scalar_lea.sflag [#allocation3], %s212_s25  ;;  %s3538_s2 = smov 8  }
  0x28   : > { %s3539_s3 = smov 128   ;;  %s243_s19 = scalar_lea.hbm %s3514_s1, %s2077_s30 }
  0x29   : > { %2107 = dma.hbm_to_vmem [thread:$0]  (!%p2657_p10), %s223_s8, 768, %s225_s6, %s213_s22, %s3539_s3, %s3539_s3, %s3538_s2  }
  0x2a   : > { %s244_s29 = sshll.u32 %s243_s19, 4  ;;  %s238_s5 = scalar_lea.vmem [#allocation5], %s2076_s26  ;;  %s245_s29 = int_to_ptr.hbm [resolvable:$true] %s244_s29 }
  0x2b   : > { %s246_s17 = sshll.u32 %s238_s5, 4  ;;  %s235_s7 = scalar_lea.sflag [#allocation6], %s234_s9  ;;  %s247_s17 = int_to_ptr.vmem [resolvable:$true] %s246_s17 }
  0x2c   : > { %2110 = dma.hbm_to_vmem [thread:$0]  (!%p2657_p10), %s245_s29, 768, %s247_s17, %s235_s7, %s3539_s3, %s3539_s3, %s3538_s2  }
  0x2d   : > { %258 = sbr.rel (%p2622_p8) target bundleno = 1117 (0x45d), region = 36  ;;  %s2685_s8 = sand.u32 (!%p2622_p8), 1, %s2515_s16  }
  0x2e   : > { %s2080_s19 = smul.u32 (!%p2622_p8), 48, %s2685_s8  ;;  %s261_s12 = scalar_lea.sflag (!%p2622_p8), [#allocation3], %s2685_s8 }
  0x30   : > { %s2689_s25 = scalar_lea.vmem (!%p2622_p8), [#allocation2], %s2080_s19 }
  0x32   : > { %2490 = dma.done.wait (%p2609_p4), %s261_s12, 768  }
  0x33   : > { %2492 = vsyncadd (%p2609_p4), %s261_s12, 4294966528  ;;  %s270_s2 = sand.u32 1, %s2600_s21   ;;  %s2696_s17 = scalar_lea.vmem [#allocation5], %s2080_s19 }
  0x34   : > { %s271_s3 = scalar_lea.sflag [#allocation6], %s270_s2 }
  0x35   : > { %2494 = dma.done.wait (%p2609_p4), %s271_s3, 768  }
  0x36   : > { %2496 = vsyncadd (%p2609_p4), %s271_s3, 4294966528 }
  0x37   : > { %2498 = dma.done.wait (%p57_p1), [#allocation6], 1280  }
  0x38   : > { %2500 = vsyncadd (%p57_p1), [#allocation6], 4294966016 }
  0x39   : > { %2502 = dma.done.wait (%p57_p1), [#allocation9], 1280  }
  0x3a   : > { %2504 = vsyncadd (%p57_p1), [#allocation9], 4294966016  ;;  %v2711_v0 = vld [vmem:[%s2696_s17] sm:$0xff]  ;;  %v2714_v1 = vld [vmem:[%s2696_s17 + $0x8] sm:$0xff]  ;;  %s2537_s21 = smov 16   ;;  %s2538_s23 = smov 48  }
  0x3b   : > { %v2717_v2 = vld [vmem:[%s2689_s25] sm:$0xff]  ;;  %v2180_v3 = vpack.i.bf16 %v2711_v0, %v2714_v1  ;;  %v2722_v4 = vld [vmem:[%s2689_s25 + $0x8] sm:$0xff]  ;;  %v342_v5 = vmul.f32 %v2711_v0, %v2711_v0  ;;  %v343_v6 = vmul.f32 %v2714_v1, %v2714_v1  ;;  %v2734_v10 = vld [vmem:[%s2689_s25 + $0x10] sm:$0xff]  ;;  %s2539_s28 = smov 80   ;;  %s2540_s9 = smov 32   ;;  %vm408_vm0 = vcmask 130048  }
  0x3c   : > { %v340_v8 = vmul.f32 %v2717_v2, %v2717_v2  ;;  %v341_v9 = vmul.f32 %v2722_v4, %v2722_v4  ;;  %v2737_v11 = vld [vmem:[%s2689_s25 + $0x18] sm:$0xff]  ;;  %v344_v13 = vmul.f32 %v2711_v0, %v2717_v2  ;;  %v345_v14 = vmul.f32 %v2714_v1, %v2722_v4  ;;  %v2748_v16 = vld [vmem:[%s2696_s17 + $0x10] sm:$0xff]  ;;  %s2541_s26 = smov 64   ;;  %s2542_s27 = smov 96   ;;  %v2786_v29 = vld [vmem:[%s2689_s25 + $0x20] sm:$0xff] }
  0x3d   : > { %2181 = vrot.lane.b32.xlu0 %v2180_v3, %s2537_s21  ;;  %v2190_v7 = vpack.i.bf16 %v342_v5, %v343_v6  ;;  %v2200_v12 = vpack.i.bf16 %v2734_v10, %v2737_v11  ;;  %v2751_v17 = vld [vmem:[%s2696_s17 + $0x18] sm:$0xff]  ;;  %v346_v20 = vmul.f32 %v2734_v10, %v2734_v10  ;;  %v347_v21 = vmul.f32 %v2737_v11, %v2737_v11  ;;  %s2543_s29 = smov 112   ;;  %v2789_v30 = vld [vmem:[%s2689_s25 + $0x28] sm:$0xff]  ;;  %v2793_v31 = vld [vmem:[%s2696_s17 + $0x20] sm:$0xff]  ;;  %s1830_s10 = scalar_lea.hbm %s3517_s4, %s2523_s18 }
  0x3e   : > { %v2185_v15 = vpack.i.bf16 %v340_v8, %v341_v9  ;;  %v2195_v18 = vpack.i.bf16 %v344_v13, %v345_v14  ;;  %v2205_v19 = vpack.i.bf16 %v2748_v16, %v2751_v17  ;;  %v2765_v23 = vmul.f32 %v2748_v16, %v2748_v16  ;;  %v2796_v32 = vld [vmem:[%s2696_s17 + $0x28] sm:$0xff]  ;;  %v420_v63 = vld [vmem:[#allocation7] sm:$0xff]  ;;  %s313_s11 = scalar_lea.vmem [#allocation10], %s2685_s8  ;;  %s1834_s13 = sshll.u32 %s1830_s10, 4  ;;  %s1835_s13 = int_to_ptr.hbm [resolvable:$true] %s1834_s13 }
  0x3f   : > { %2191 = vrot.lane.b32.xlu1 %v2190_v7, %s2538_s23  ;;  %2201 = vrot.lane.b32.xlu2 %v2200_v12, %s2539_s28  ;;  %v2210_v22 = vpack.i.bf16 %v346_v20, %v347_v21  ;;  %v2769_v24 = vmul.f32 %v2751_v17, %v2751_v17  ;;  %v2774_v25 = vmul.f32 %v2748_v16, %v2734_v10  ;;  %vm411_vm1 = vcmask 261120   ;;  %v421_v3 = vld [vmem:[#allocation7 + $0x8] sm:$0xff]  ;;  %s1832_s22 = sshll.u32 %s313_s11, 4  ;;  %s1821_s19 = scalar_lea.sflag [#allocation4], %s2685_s8  ;;  %s1833_s22 = int_to_ptr.vmem [resolvable:$true] %s1832_s22 }
  0x40   : > { %v2778_v26 = vmul.f32 %v2751_v17, %v2737_v11  ;;  %v352_v33 = vmul.f32 %v2786_v29, %v2786_v29  ;;  %v353_v34 = vmul.f32 %v2789_v30, %v2789_v30  ;;  %v2805_v35 = vpack.i.bf16 %v2793_v31, %v2796_v32  ;;  %s2451_s12 = sshra.s32 %s1835_s13, 4  ;;  %s2457_s18 = scalar_lea.hbm %s3517_s4, 2  ;;  %s2452_s12 = int_to_ptr.hbm [resolvable:$true] %s2451_s12 }
  0x41   : > { %v2225_v27 = vpack.i.bf16 %v2765_v23, %v2769_v24  ;;  %v2235_v37 = vpack.i.bf16 %v2786_v29, %v2789_v30  ;;  %vm414_vm2 = vcmask 392192   ;;  %vm417_vm3 = vcmask 523264   ;;  %s2453_s25 = scalar_lea.hbm %s2452_s12, 1  ;;  %p2458_p8 = scmp.lt.s32.totalorder %s2452_s12, %s3517_s4 }
  0x42   : > { %v2230_v28 = vpack.i.bf16 %v2774_v25, %v2778_v26  ;;  %v2807_v36 = vpack.i.bf16 %v352_v33, %v353_v34  ;;  %vm624_vm4 = vcmask 654336   ;;  %vm627_vm5 = vcmask 785408   ;;  %p2454_p1 = scmp.ne.s32.totalorder %s2452_s12, %s2453_s25  ;;  %p2459_p12 = scmp.lt.s32.totalorder %s2457_s18, %s2453_s25 }
  0x43   : > { %vm630_vm6 = vcmask 916480  }
  0x44   : > { %p2455_p2 = pnand %p2454_p1, %p2650_p7  ;;  %p2460_p13 = por %p2459_p12, %p2458_p8 }
  0x45   : > { %2186 = vrot.lane.b32.xlu0 %v2185_v15, %s2540_s9 }
  0x46   : > { %p2456_p4 = pneg %p2455_p2 }
  0x47   : > { %2196 = vrot.lane.b32.xlu1 %v2195_v18, %s2541_s26  ;;  %2206 = vrot.lane.b32.xlu2 %v2205_v19, %s2542_s27 }
  0x48   : > { %p2461_p0 = pnand %p2460_p13, %p2456_p4 }
  0x4d   : > { %2211 = vrot.lane.b32.xlu0 %v2210_v22, %s2543_s29 }
  0x4f   : > { %2216 = vrot.lane.b32.xlu1 %v2205_v19, %s2537_s21  ;;  %2221 = vrot.lane.b32.xlu2 %v2210_v22, %s2540_s9  ;;  %v2833_v22 = vld [vmem:[#allocation7 + $0x10] sm:$0xff] }
  0x55   : > { %2226 = vrot.lane.b32.xlu0 %v2225_v27, %s2538_s23 }
  0x57   : > { %2231 = vrot.lane.b32.xlu1 %v2230_v28, %s2541_s26  ;;  %2236 = vrot.lane.b32.xlu2 %v2235_v37, %s2539_s28 }
  0x5d   : > { %2241 = vrot.lane.b32.xlu0 %v2805_v35, %s2542_s27 }
  0x5f   : > { %2246 = vrot.lane.b32.xlu1 %v2807_v36, %s2543_s29 }
  0x99   : > { %v2202_v38 = vpop.permute.xlu2 %2201 }
  0x9a   : > { %v2203_v44 = vunpack.i.l.bf16 %v2202_v38  ;;  %v2204_v59 = vunpack.i.h.bf16 %v2202_v38 }
  0xa1   : > { %v2207_v47 = vpop.permute.xlu2 %2206 }
  0xa2   : > { %v2208_v61 = vunpack.i.l.bf16 %v2207_v47  ;;  %v2209_v6 = vunpack.i.h.bf16 %v2207_v47 }
  0xa9   : > { %v2222_v13 = vpop.permute.xlu2 %2221 }
  0xaa   : > { %v2224_v27 = vunpack.i.h.bf16 %v2222_v13  ;;  %v2223_v28 = vunpack.i.l.bf16 %v2222_v13  ;;  %v469_v13 = vld [vmem:[#allocation8] sm:$0xff] }
  0xaf   : > { %v2182_v39 = vpop.permute.xlu0 %2181 }
  0xb0   : > { %v2184_v41 = vunpack.i.h.bf16 %v2182_v39  ;;  %v2183_v42 = vunpack.i.l.bf16 %v2182_v39 }
  0xb1   : > { %v2192_v40 = vpop.permute.xlu1 %2191 }
  0xb2   : > { %v409_v48 = vsel %vm408_vm0, %v2717_v2, %v2184_v41  ;;  %v410_v49 = vsel %vm408_vm0, %v2722_v4, %v2183_v42  ;;  %v2194_v50 = vunpack.i.h.bf16 %v2192_v40  ;;  %v2193_v51 = vunpack.i.l.bf16 %v2192_v40 }
  0xb7   : > { %v2187_v43 = vpop.permute.xlu0 %2186 }
  0xb8   : > { %v2189_v45 = vunpack.i.h.bf16 %v2187_v43  ;;  %v2188_v46 = vunpack.i.l.bf16 %v2187_v43 }
  0xb9   : > { %v2197_v52 = vpop.permute.xlu1 %2196 }
  0xba   : > { %v2199_v53 = vunpack.i.h.bf16 %v2197_v52  ;;  %v2198_v54 = vunpack.i.l.bf16 %v2197_v52  ;;  %v413_v55 = vsel %vm411_vm1, %v410_v49, %v2188_v46  ;;  %v412_v56 = vsel %vm411_vm1, %v409_v48, %v2189_v45  ;;  %v2846_v48 = vld [vmem:[#allocation7 + $0x18] sm:$0xff] }
  0xbb   : > { %v416_v57 = vsel %vm414_vm2, %v413_v55, %v2193_v51  ;;  %v415_v58 = vsel %vm414_vm2, %v412_v56, %v2194_v50  ;;  %v470_v51 = vld [vmem:[#allocation8 + $0x8] sm:$0xff]  ;;  %v2237_v55 = vpop.permute.xlu2 %2236 }
  0xbc   : > { %v419_v60 = vsel %vm417_vm3, %v416_v57, %v2198_v54  ;;  %v418_v62 = vsel %vm417_vm3, %v415_v58, %v2199_v53  ;;  %505 = vmatpush.msra.mxu1 %v470_v51  ;;  %v987_v53 = vld [vmem:[#allocation7 + $0x20] sm:$0xff]  ;;  %v2239_v58 = vunpack.i.h.bf16 %v2237_v55 }
  0xbd   : > { %442 = vmatpush.msra.mxu0 %v419_v60  ;;  %2070 = vmatpush.msra.mxu3 %v419_v60  ;;  %v626_v5 = vsel %vm624_vm4, %v419_v60, %v2203_v44  ;;  %v625_v12 = vsel %vm624_vm4, %v418_v62, %v2204_v59  ;;  %v2238_v59 = vunpack.i.l.bf16 %v2237_v55 }
  0xbe   : > { %v629_v14 = vsel %vm627_vm5, %v626_v5, %v2208_v61  ;;  %v628_v21 = vsel %vm627_vm5, %v625_v12, %v2209_v6  ;;  %v2864_v12 = vld [vmem:[#allocation7 + $0x38] sm:$0xff]  ;;  %506 = vmatpush.msra.mxu1 %v469_v13 }
  0xbf   : > { %v2212_v7 = vpop.permute.xlu0 %2211  ;;  %443 = vmatpush.msra.mxu0 %v418_v62  ;;  %2071 = vmatpush.msra.mxu3 %v418_v62 }
  0xc0   : > { %v2214_v8 = vunpack.i.h.bf16 %v2212_v7  ;;  %v2213_v9 = vunpack.i.l.bf16 %v2212_v7  ;;  %1982 = vmatmul.msk.f32.vlgmr.msra.gmra.mxu0 %vm408_vm0, %v420_v63  ;;  %1983 = vmatmul.msk.f32.vlgmr.msra.gmra.mxu3 %vm408_vm0, %v421_v3 }
  0xc1   : > { %v2217_v15 = vpop.permute.xlu1 %2216  ;;  %2072 = vmatpush.msrb.mxu3 %v470_v51  ;;  %v728_v51 = vld [vmem:[#allocation8 + $0x18] sm:$0xff] }
  0xc2   : > { %v632_v18 = vsel %vm630_vm6, %v629_v14, %v2213_v9  ;;  %v2219_v19 = vunpack.i.h.bf16 %v2217_v15  ;;  %v2218_v20 = vunpack.i.l.bf16 %v2217_v15  ;;  %v631_v33 = vsel %vm630_vm6, %v628_v21, %v2214_v8  ;;  %v988_v8 = vld [vmem:[#allocation7 + $0x28] sm:$0xff]  ;;  %v2860_v9 = vld [vmem:[#allocation7 + $0x30] sm:$0xff]  ;;  %783 = vmatpush.msrb.mxu0 %v728_v51 }
  0xc3   : > { %658 = vmatpush.msra.mxu2 %v632_v18  ;;  %2073 = vmatpush.msrb.mxu3 %v469_v13  ;;  %v358_v14 = vsub.f32 %v2717_v2, %v2711_v0  ;;  %v359_v15 = vsub.f32 %v2722_v4, %v2714_v1  ;;  %v363_v21 = vsub.f32 %v2737_v11, %v2751_v17 }
  0xc4   : > { %v978_v34 = vsel %vm408_vm0, %v2734_v10, %v2219_v19  ;;  %v979_v37 = vsel %vm408_vm0, %v2737_v11, %v2218_v20  ;;  %v362_v20 = vsub.f32 %v2734_v10, %v2748_v16  ;;  %v2888_v17 = vmul.f32 %v2793_v31, %v2793_v31 }
  0xc5   : > { %659 = vmatpush.msra.mxu2 %v631_v33  ;;  %v981_v39 = vsel %vm411_vm1, %v979_v37, %v2223_v28  ;;  %v980_v40 = vsel %vm411_vm1, %v978_v34, %v2224_v27  ;;  %v360_v18 = vand.u32 2147483647, %v358_v14  ;;  %v361_v19 = vand.u32 2147483647, %v359_v15 }
  0xc6   : > { %1994 = vmatmul.msk.f32.vlgmr.msra.gmra.mxu2 %vm408_vm0, %v2833_v22  ;;  %v364_v27 = vand.u32 2147483647, %v362_v20  ;;  %v365_v28 = vand.u32 2147483647, %v363_v21  ;;  %v368_v33 = vsub.f32 %v2786_v29, %v2793_v31  ;;  %v369_v34 = vsub.f32 %v2789_v30, %v2796_v32 }
  0xc7   : > { %v2227_v38 = vpop.permute.xlu0 %2226 }
  0xc8   : > { %v2229_v41 = vunpack.i.h.bf16 %v2227_v38  ;;  %v2228_v42 = vunpack.i.l.bf16 %v2227_v38  ;;  %v366_v0 = vadd.f32 %v364_v27, %v360_v18  ;;  %v367_v2 = vadd.f32 %v365_v28, %v361_v19 }
  0xc9   : > { %v2232_v43 = vpop.permute.xlu1 %2231  ;;  %v370_v37 = vand.u32 2147483647, %v368_v33  ;;  %v371_v1 = vand.u32 2147483647, %v369_v34 }
  0xca   : > { %v2234_v44 = vunpack.i.h.bf16 %v2232_v43  ;;  %v2233_v45 = vunpack.i.l.bf16 %v2232_v43  ;;  %v983_v46 = vsel %vm414_vm2, %v981_v39, %v2228_v42  ;;  %v982_v47 = vsel %vm414_vm2, %v980_v40, %v2229_v41 }
  0xcb   : > { %v372_v4 = vadd.f32 %v370_v37, %v366_v0  ;;  %v373_v38 = vadd.f32 %v371_v1, %v367_v2  ;;  %v2892_v41 = vmul.f32 %v2796_v32, %v2796_v32 }
  0xcc   : > { %v985_v49 = vsel %vm417_vm3, %v983_v46, %v2233_v45  ;;  %v984_v50 = vsel %vm417_vm3, %v982_v47, %v2234_v44  ;;  %v356_v44 = vmul.f32 %v2793_v31, %v2786_v29  ;;  %v357_v45 = vmul.f32 %v2796_v32, %v2789_v30 }
  0xcd   : > { %1009 = vmatpush.msrb.mxu2 %v985_v49  ;;  %v1195_v62 = vsel %vm624_vm4, %v985_v49, %v2238_v59  ;;  %v1194_v63 = vsel %vm624_vm4, %v984_v50, %v2239_v58  ;;  %v374_v39 = vmul.f32 0.33333334, %v372_v4  ;;  %v375_v40 = vmul.f32 0.33333334, %v373_v38 }
  0xce   : > { %1995 = vmatmul.msk.f32.gmra.mxu2 %vm408_vm0, %v2846_v48  ;;  %v2260_v43 = vpack.i.bf16 %v2888_v17, %v2892_v41  ;;  %v2265_v46 = vpack.i.bf16 %v356_v44, %v357_v45  ;;  %v2280_v49 = vpack.i.bf16 %v2774_v25, %v356_v44  ;;  %v2275_v31 = vpack.i.bf16 %v2778_v26, %v357_v45  ;;  %v1038_v45 = vld [vmem:[#allocation8 + $0x28] sm:$0xff] }
  0xcf   : > { %1010 = vmatpush.msrb.mxu2 %v984_v50  ;;  %v2242_v52 = vpop.permute.xlu0 %2241  ;;  %v2270_v10 = vpack.i.bf16 %v374_v39, %v375_v40 }
  0xd0   : > { %v2244_v56 = vunpack.i.h.bf16 %v2242_v52  ;;  %v2243_v57 = vunpack.i.l.bf16 %v2242_v52  ;;  %v727_v52 = vld [vmem:[#allocation8 + $0x10] sm:$0xff] }
  0xd1   : > { %v2247_v54 = vpop.permute.xlu1 %2246  ;;  %784 = vmatpush.msrb.mxu0 %v727_v52 }
  0xd2   : > { %v2249_v60 = vunpack.i.h.bf16 %v2247_v54  ;;  %v2248_v61 = vunpack.i.l.bf16 %v2247_v54  ;;  %v1197_v3 = vsel %vm627_vm5, %v1195_v62, %v2243_v57  ;;  %v1196_v5 = vsel %vm627_vm5, %v1194_v63, %v2244_v56 }
  0xd4   : > { %v1199_v6 = vsel %vm630_vm6, %v1197_v3, %v2248_v61  ;;  %v1198_v7 = vsel %vm630_vm6, %v1196_v5, %v2249_v60 }
  0xd5   : > { %1225 = vmatpush.msra.mxu2 %v1199_v6 }
  0xd6   : > { %2018 = vmatmul.msk.f32.vlgmr.msrb.gmra.mxu2 %vm408_vm0, %v987_v53 }
  0xd7   : > { %1226 = vmatpush.msra.mxu2 %v1198_v7 }
  0xde   : > { %2019 = vmatmul.msk.f32.gmra.mxu2 %vm408_vm0, %v988_v8 }
  0xe6   : > { %2030 = vmatmul.msk.f32.vlgmr.msra.gmra.mxu2 %vm408_vm0, %v2860_v9 }
  0xee   : > { %2031 = vmatmul.msk.f32.gmra.mxu2 %vm408_vm0, %v2864_v12 }
 0x13d   : > { %v445_v16 = vpop.f32.mrf.mxu0 }
 0x13e   : > { %457 = vrot.lane.b32.xlu1 %v445_v16, %s2542_s27  ;;  %453 = vrot.lane.b32.xlu2 %v445_v16, %s2543_s29 }
 0x13f   : > { %1984 = vmatmul.msk.f32.vlgmr.msra.gmra.mxu1 %vm408_vm0, %v445_v16 }
 0x143   : > { %v448_v11 = vpop.f32.mrf.mxu3 }
 0x144   : > { %455 = vrot.lane.b32.xlu0 %v448_v11, %s2543_s29 }
 0x146   : > { %463 = vrot.lane.b32.xlu1 %v448_v11, %s2539_s28  ;;  %459 = vrot.lane.b32.xlu2 %v448_v11, %s2542_s27 }
 0x147   : > { %1985 = vmatmul.msk.f32.gmra.mxu1 %vm408_vm0, %v448_v11 }
 0x149   : > { %v2895_v42 = vpop.f32.mrf.mxu2 }
 0x14a   : > { %1998 = vmatmul.msk.f32.vlgmr.msrb.gmra.mxu0 %vm408_vm0, %v2895_v42 }
 0x14c   : > { %461 = vrot.lane.b32.xlu0 %v445_v16, %s2539_s28 }
 0x14e   : > { %2261 = vrot.lane.b32.xlu1 %v2260_v43, %s2538_s23  ;;  %2251 = vrot.lane.b32.xlu2 %v2805_v35, %s2537_s21 }
 0x151   : > { %v2907_v47 = vpop.f32.mrf.mxu2 }
 0x152   : > { %1999 = vmatmul.msk.f32.gmra.mxu0 %vm408_vm0, %v2907_v47 }
 0x154   : > { %2256 = vrot.lane.b32.xlu0 %v2807_v36, %s2540_s9 }
 0x156   : > { %465 = vrot.lane.b32.xlu1 %v445_v16, %s2541_s26  ;;  %2266 = vrot.lane.b32.xlu2 %v2265_v46, %s2541_s26  ;;  %v1295_v46 = vld [vmem:[#allocation8 + $0x38] sm:$0xff] }
 0x159   : > { %v2915_v35 = vpop.f32.mrf.mxu2 }
 0x15c   : > { %2271 = vrot.lane.b32.xlu0 %v2270_v10, %s2539_s28 }
 0x15e   : > { %467 = vrot.lane.b32.xlu2 %v448_v11, %s2541_s26  ;;  %2281 = vrot.lane.b32.xlu1 %v2280_v49, %s2537_s21  ;;  %v1564_v49 = vld [vmem:[#allocation7 + $0x40] sm:$0xff] }
 0x161   : > { %v2925_v32 = vpop.f32.mrf.mxu2 }
 0x164   : > { %2276 = vrot.lane.b32.xlu0 %v2275_v31, %s2537_s21 }
 0x166   : > { %696 = vrot.lane.b32.xlu1 %v2895_v42, %s2542_s27  ;;  %692 = vrot.lane.b32.xlu2 %v2895_v42, %s2543_s29 }
 0x169   : > { %v2933_v25 = vpop.f32.mrf.mxu2 }
 0x16c   : > { %694 = vrot.lane.b32.xlu0 %v2907_v47, %s2543_s29 }
 0x16e   : > { %700 = vrot.lane.b32.xlu2 %v2895_v42, %s2539_s28  ;;  %1020 = vrot.lane.b32.xlu1 %v2915_v35, %s2543_s29 }
 0x171   : > { %v2947_v26 = vpop.f32.mrf.mxu2 }
 0x174   : > { %1259 = vrot.lane.b32.xlu0 %v2933_v25, %s2543_s29 }
 0x176   : > { %698 = vrot.lane.b32.xlu2 %v2907_v47, %s2542_s27  ;;  %1024 = vrot.lane.b32.xlu1 %v2915_v35, %s2542_s27 }
 0x17c   : > { %1263 = vrot.lane.b32.xlu0 %v2933_v25, %s2542_s27 }
 0x17e   : > { %704 = vrot.lane.b32.xlu2 %v2895_v42, %s2541_s26  ;;  %1022 = vrot.lane.b32.xlu1 %v2925_v32, %s2543_s29 }
 0x184   : > { %1261 = vrot.lane.b32.xlu0 %v2947_v26, %s2543_s29 }
 0x186   : > { %702 = vrot.lane.b32.xlu2 %v2907_v47, %s2539_s28  ;;  %1026 = vrot.lane.b32.xlu1 %v2925_v32, %s2542_s27 }
 0x18c   : > { %1267 = vrot.lane.b32.xlu0 %v2933_v25, %s2539_s28 }
 0x18e   : > { %706 = vrot.lane.b32.xlu2 %v2907_v47, %s2541_s26  ;;  %1028 = vrot.lane.b32.xlu1 %v2915_v35, %s2539_s28 }
 0x194   : > { %1265 = vrot.lane.b32.xlu0 %v2947_v26, %s2542_s27 }
 0x196   : > { %1030 = vrot.lane.b32.xlu1 %v2925_v32, %s2539_s28  ;;  %708 = vrot.lane.b32.xlu2 %v2895_v42, %s2538_s23 }
 0x198   : > { %v454_v36 = vpop.permute.xlu2 %453 }
 0x199   : > { %1986 = vmatmul.msk.f32.gmra.mxu1 %vm408_vm0, %v454_v36  ;;  %v1565_v36 = vld [vmem:[#allocation7 + $0x48] sm:$0xff] }
 0x19c   : > { %1271 = vrot.lane.b32.xlu0 %v2933_v25, %s2541_s26 }
 0x19e   : > { %1032 = vrot.lane.b32.xlu1 %v2915_v35, %s2541_s26  ;;  %710 = vrot.lane.b32.xlu2 %v2907_v47, %s2538_s23 }
 0x1a0   : > { %v460_v50 = vpop.permute.xlu2 %459 }
 0x1a4   : > { %1269 = vrot.lane.b32.xlu0 %v2947_v26, %s2539_s28 }
 0x1a6   : > { %712 = vrot.lane.b32.xlu2 %v2895_v42, %s2540_s9  ;;  %1275 = vrot.lane.b32.xlu1 %v2933_v25, %s2538_s23 }
 0x1a8   : > { %v2252_v53 = vpop.permute.xlu2 %2251 }
 0x1a9   : > { %v2254_v62 = vunpack.i.h.bf16 %v2252_v53  ;;  %v2253_v63 = vunpack.i.l.bf16 %v2252_v53 }
 0x1ab   : > { %v1553_v3 = vsel %vm408_vm0, %v2786_v29, %v2254_v62  ;;  %v1554_v5 = vsel %vm408_vm0, %v2789_v30, %v2253_v63 }
 0x1ac   : > { %714 = vrot.lane.b32.xlu0 %v2907_v47, %s2540_s9 }
 0x1ae   : > { %1034 = vrot.lane.b32.xlu2 %v2925_v32, %s2541_s26 }
 0x1b0   : > { %v458_v54 = vpop.permute.xlu1 %457  ;;  %v2267_v55 = vpop.permute.xlu2 %2266 }
 0x1b1   : > { %v2269_v20 = vunpack.i.h.bf16 %v2267_v55  ;;  %v2268_v21 = vunpack.i.l.bf16 %v2267_v55 }
 0x1b4   : > { %1273 = vrot.lane.b32.xlu0 %v2947_v26, %s2541_s26 }
 0x1b6   : > { %v456_v56 = vpop.permute.xlu0 %455 }
 0x1b7   : > { %1987 = vmatmul.msk.f32.gmra.mxu1 %vm408_vm0, %v456_v56 }
 0x1b8   : > { %v464_v57 = vpop.permute.xlu1 %463  ;;  %v468_v58 = vpop.permute.xlu2 %467 }
 0x1bc   : > { %1283 = vrot.lane.b32.xlu0 %v2933_v25, %s2537_s21 }
 0x1be   : > { %v462_v59 = vpop.permute.xlu0 %461 }
 0x1bf   : > { %1988 = vmatmul.msk.f32.gmra.mxu1 %vm408_vm0, %v458_v54 }
 0x1c0   : > { %v2262_v60 = vpop.permute.xlu1 %2261  ;;  %v693_v61 = vpop.permute.xlu2 %692 }
 0x1c1   : > { %2000 = vmatmul.msk.f32.gmra.mxu0 %vm408_vm0, %v693_v61  ;;  %v2264_v7 = vunpack.i.h.bf16 %v2262_v60  ;;  %v2263_v8 = vunpack.i.l.bf16 %v2262_v60  ;;  %v508_v60 = vpop.f32.mrf.mxu1 }
 0x1c6   : > { %v2257_v6 = vpop.permute.xlu0 %2256 }
 0x1c7   : > { %v2259_v13 = vunpack.i.h.bf16 %v2257_v6  ;;  %v2258_v14 = vunpack.i.l.bf16 %v2257_v6  ;;  %1989 = vmatmul.msk.f32.gmra.mxu1 %vm408_vm0, %v460_v50 }
 0x1c8   : > { %v466_v15 = vpop.permute.xlu1 %465 }
 0x1c9   : > { %v1555_v18 = vsel %vm411_vm1, %v1553_v3, %v2259_v13  ;;  %v1556_v19 = vsel %vm411_vm1, %v1554_v5, %v2258_v14  ;;  %1992 = vmatmul.msk.f32.vlgmr.msrb.gmra.mxu3 %vm408_vm0, %v466_v15  ;;  %v511_v3 = vpop.f32.mrf.mxu1 }
 0x1ca   : > { %v1558_v29 = vsel %vm414_vm2, %v1556_v19, %v2263_v8  ;;  %v1557_v30 = vsel %vm414_vm2, %v1555_v18, %v2264_v7  ;;  %v1619_v18 = vld [vmem:[#allocation8 + $0x48] sm:$0xff]  ;;  %v786_v19 = vpop.f32.mrf.mxu0 }
 0x1cb   : > { %v1560_v28 = vsel %vm417_vm3, %v1558_v29, %v2268_v21  ;;  %v1559_v33 = vsel %vm417_vm3, %v1557_v30, %v2269_v20  ;;  %v1618_v21 = vld [vmem:[#allocation8 + $0x40] sm:$0xff] }
 0x1ce   : > { %v2272_v27 = vpop.permute.xlu0 %2271 }
 0x1cf   : > { %v2274_v34 = vunpack.i.h.bf16 %v2272_v27  ;;  %v2273_v0 = vunpack.i.l.bf16 %v2272_v27  ;;  %1990 = vmatmul.msk.f32.gmra.mxu1 %vm408_vm0, %v462_v59  ;;  %v538_v27 = vmul.f32 %v508_v60, %v508_v60 }
 0x1d0   : > { %v2282_v1 = vpop.permute.xlu1 %2281 }
 0x1d1   : > { %1993 = vmatmul.msk.f32.gmra.mxu3 %vm408_vm0, %v468_v58  ;;  %v1562_v2 = vsel %vm624_vm4, %v1560_v28, %v2273_v0  ;;  %v1561_v37 = vsel %vm624_vm4, %v1559_v33, %v2274_v34  ;;  %v2284_v4 = vunpack.i.h.bf16 %v2282_v1  ;;  %v2283_v38 = vunpack.i.l.bf16 %v2282_v1 }
 0x1d2   : > { %1586 = vmatpush.msrb.mxu1 %v1562_v2  ;;  %v3065_v30 = vpop.f32.mrf.mxu0 }
 0x1d3   : > { %v633_v11 = vsel %vm408_vm0, %v2765_v23, %v2284_v4  ;;  %v1200_v44 = vsel %vm408_vm0, %v2888_v17, %v2283_v38  ;;  %v1294_v23 = vld [vmem:[#allocation8 + $0x30] sm:$0xff] }
 0x1d4   : > { %1587 = vmatpush.msrb.mxu1 %v1561_v37 }
 0x1d6   : > { %v2277_v39 = vpop.permute.xlu0 %2276  ;;  %1658 = vmatpush.msra.mxu1 %v1619_v18 }
 0x1d7   : > { %v2279_v40 = vunpack.i.h.bf16 %v2277_v39  ;;  %v2278_v10 = vunpack.i.l.bf16 %v2277_v39  ;;  %1991 = vmatmul.msk.f32.gmra.mxu1 %vm408_vm0, %v464_v57 }
 0x1d8   : > { %v697_v17 = vpop.permute.xlu1 %696  ;;  %1659 = vmatpush.msra.mxu1 %v1618_v21 }
 0x1d9   : > { %v634_v16 = vsel %vm408_vm0, %v2769_v24, %v2279_v40  ;;  %v1201_v43 = vsel %vm408_vm0, %v2892_v41, %v2278_v10  ;;  %v1037_v24 = vld [vmem:[#allocation8 + $0x20] sm:$0xff]  ;;  %v701_v41 = vpop.permute.xlu2 %700  ;;  %v539_v10 = vmul.f32 %v511_v3, %v511_v3 }
 0x1da   : > { %681 = vmatpush.msra.mxu3 %v634_v16  ;;  %1248 = vmatpush.msrb.mxu2 %v1201_v43 }
 0x1dc   : > { %682 = vmatpush.msra.mxu3 %v633_v11  ;;  %1249 = vmatpush.msrb.mxu2 %v1200_v44 }
 0x1dd   : > { %1996 = vmatmul.msk.f32.vlgmr.msra.gmra.mxu3 %vm408_vm0, %v2833_v22  ;;  %2032 = vmatmul.msk.f32.vlgmr.msrb.gmra.mxu2 %vm408_vm0, %v2860_v9 }
 0x1de   : > { %v695_v31 = vpop.permute.xlu0 %694  ;;  %1073 = vmatpush.msrb.mxu3 %v1038_v45  ;;  %1350 = vmatpush.msra.mxu2 %v1295_v46 }
 0x1df   : > { %2001 = vmatmul.msk.f32.gmra.mxu0 %vm408_vm0, %v695_v31  ;;  %2054 = vmatmul.msk.f32.vlgmr.msrb.gmra.mxu1 %vm408_vm0, %v1564_v49 }
 0x1e0   : > { %1074 = vmatpush.msrb.mxu3 %v1037_v24  ;;  %1351 = vmatpush.msra.mxu2 %v1294_v23  ;;  %v1021_v50 = vpop.permute.xlu1 %1020 }
 0x1e1   : > { %v699_v9 = vpop.permute.xlu2 %698 }
 0x1e2   : > { %2074 = vmatpush.msra.mxu3 %v1295_v46 }
 0x1e4   : > { %2075 = vmatpush.msra.mxu3 %v1294_v23 }
 0x1e5   : > { %1997 = vmatmul.msk.f32.gmra.mxu3 %vm408_vm0, %v2846_v48  ;;  %2033 = vmatmul.msk.f32.gmra.mxu2 %vm408_vm0, %v2864_v12 }
 0x1e6   : > { %v1260_v22 = vpop.permute.xlu0 %1259 }
 0x1e7   : > { %2002 = vmatmul.msk.f32.gmra.mxu0 %vm408_vm0, %v697_v17  ;;  %2055 = vmatmul.msk.f32.gmra.mxu1 %vm408_vm0, %v1565_v36 }
 0x1e8   : > { %v1025_v52 = vpop.permute.xlu1 %1024 }
 0x1e9   : > { %v705_v48 = vpop.permute.xlu2 %704 }
 0x1ed   : > { %2020 = vmatmul.msk.f32.vlgmr.msrb.gmra.mxu3 %vm408_vm0, %v2915_v35  ;;  %2034 = vmatmul.msk.f32.vlgmr.msra.gmra.mxu2 %vm408_vm0, %v2933_v25 }
 0x1ee   : > { %v1264_v51 = vpop.permute.xlu0 %1263 }
 0x1ef   : > { %2003 = vmatmul.msk.f32.gmra.mxu0 %vm408_vm0, %v699_v9 }
 0x1f0   : > { %v1023_v54 = vpop.permute.xlu1 %1022 }
 0x1f1   : > { %v703_v53 = vpop.permute.xlu2 %702 }
 0x1f5   : > { %2021 = vmatmul.msk.f32.gmra.mxu3 %vm408_vm0, %v2925_v32  ;;  %2035 = vmatmul.msk.f32.gmra.mxu2 %vm408_vm0, %v2947_v26 }
 0x1f6   : > { %v1262_v12 = vpop.permute.xlu0 %1261 }
 0x1f7   : > { %2004 = vmatmul.msk.f32.gmra.mxu0 %vm408_vm0, %v701_v41 }
 0x1f8   : > { %v1027_v56 = vpop.permute.xlu1 %1026 }
 0x1f9   : > { %v707_v32 = vpop.permute.xlu2 %706 }
 0x1fd   : > { %2022 = vmatmul.msk.f32.gmra.mxu3 %vm408_vm0, %v1021_v50  ;;  %2036 = vmatmul.msk.f32.gmra.mxu2 %vm408_vm0, %v1260_v22 }
 0x1fe   : > { %v1268_v35 = vpop.permute.xlu0 %1267 }
 0x1ff   : > { %2005 = vmatmul.msk.f32.gmra.mxu0 %vm408_vm0, %v703_v53 }
 0x200   : > { %v1029_v59 = vpop.permute.xlu1 %1028 }
 0x201   : > { %v709_v57 = vpop.permute.xlu2 %708 }
 0x205   : > { %2023 = vmatmul.msk.f32.gmra.mxu3 %vm408_vm0, %v1023_v54  ;;  %2037 = vmatmul.msk.f32.gmra.mxu2 %vm408_vm0, %v1262_v12 }
 0x206   : > { %v1266_v55 = vpop.permute.xlu0 %1265 }
 0x207   : > { %2006 = vmatmul.msk.f32.gmra.mxu0 %vm408_vm0, %v705_v48 }
 0x208   : > { %v1031_v63 = vpop.permute.xlu1 %1030 }
 0x209   : > { %v711_v61 = vpop.permute.xlu2 %710 }
 0x20d   : > { %2024 = vmatmul.msk.f32.gmra.mxu3 %vm408_vm0, %v1025_v52  ;;  %2038 = vmatmul.msk.f32.gmra.mxu2 %vm408_vm0, %v1264_v51 }
 0x20e   : > { %v1272_v58 = vpop.permute.xlu0 %1271 }
 0x20f   : > { %2007 = vmatmul.msk.f32.gmra.mxu0 %vm408_vm0, %v707_v32  ;;  %v846_v32 = vmul.f32 %v786_v19, %v786_v19 }
 0x210   : > { %v1033_v7 = vpop.permute.xlu1 %1032 }
 0x211   : > { %v713_v5 = vpop.permute.xlu2 %712 }
 0x215   : > { %2025 = vmatmul.msk.f32.gmra.mxu3 %vm408_vm0, %v1027_v56  ;;  %2039 = vmatmul.msk.f32.gmra.mxu2 %vm408_vm0, %v1266_v55 }
 0x216   : > { %v1270_v62 = vpop.permute.xlu0 %1269  ;;  %v514_v8 = vpop.f32.mrf.mxu1 }
 0x217   : > { %2008 = vmatmul.msk.f32.gmra.mxu0 %vm408_vm0, %v709_v57  ;;  %v540_v28 = vmul.f32 %v514_v8, %v514_v8  ;;  %v542_v33 = vmul.f32 %v514_v8, %v508_v60 }
 0x219   : > { %v1035_v13 = vpop.permute.xlu2 %1034 }
 0x21d   : > { %2026 = vmatmul.msk.f32.gmra.mxu3 %vm408_vm0, %v1029_v59  ;;  %2040 = vmatmul.msk.f32.gmra.mxu2 %vm408_vm0, %v1268_v35 }
 0x21e   : > { %v715_v6 = vpop.permute.xlu0 %714 }
 0x21f   : > { %2009 = vmatmul.msk.f32.gmra.mxu0 %vm408_vm0, %v711_v61 }
 0x225   : > { %2027 = vmatmul.msk.f32.gmra.mxu3 %vm408_vm0, %v1031_v63  ;;  %2041 = vmatmul.msk.f32.gmra.mxu2 %vm408_vm0, %v1270_v62 }
 0x226   : > { %v1274_v14 = vpop.permute.xlu0 %1273 }
 0x227   : > { %2010 = vmatmul.msk.f32.gmra.mxu0 %vm408_vm0, %v713_v5 }
 0x22d   : > { %2028 = vmatmul.msk.f32.gmra.mxu3 %vm408_vm0, %v1033_v7  ;;  %2042 = vmatmul.msk.f32.gmra.mxu2 %vm408_vm0, %v1272_v58 }
 0x22f   : > { %2011 = vmatmul.msk.f32.gmra.mxu0 %vm408_vm0, %v715_v6 }
 0x234   : > { %v517_v15 = vpop.f32.mrf.mxu1 }
 0x235   : > { %2029 = vmatmul.msk.f32.gmra.mxu3 %vm408_vm0, %v1035_v13  ;;  %2043 = vmatmul.msk.f32.gmra.mxu2 %vm408_vm0, %v1274_v14  ;;  %v541_v16 = vmul.f32 %v517_v15, %v517_v15  ;;  %v543_v11 = vmul.f32 %v517_v15, %v511_v3 }
 0x23c   : > { %v520_v20 = vpop.f32.mrf.mxu1 }
 0x23d   : > { %v544_v2 = vsub.f32 %v520_v20, %v538_v27 }
 0x23e   : > { %v3067_v38 = vpop.f32.mrf.mxu0 }
 0x23f   : > { %v3070_v39 = vmul.f32 %v3067_v38, %v786_v19 }
 0x244   : > { %v523_v29 = vpop.f32.mrf.mxu1 }
 0x245   : > { %v545_v45 = vsub.f32 %v523_v29, %v539_v10 }
 0x24c   : > { %v526_v34 = vpop.f32.mrf.mxu1  ;;  %v532_v0 = vpop.f32.mrf.mxu3 }
 0x24d   : > { %v546_v37 = vsub.f32 %v526_v34, %v540_v28  ;;  %v548_v1 = vsub.f32 %v532_v0, %v542_v33  ;;  %v848_v34 = vmul.f32 %v3067_v38, %v3067_v38  ;;  %v1284_v0 = vpop.permute.xlu0 %1283 }
 0x24e   : > { %2048 = vmatmul.msk.f32.vlgmr.msra.gmra.mxu3 %vm408_vm0, %v1284_v0 }
 0x24f   : > { %v554_v4 = vadd.f32 %v546_v37, %v544_v2  ;;  %v550_v51 = vmul.f32 2.0, %v548_v1 }
 0x251   : > { %v556_v40 = vadd.f32 0.0009, %v554_v4  ;;  %v552_v56 = vadd.f32 0.0009, %v550_v51 }
 0x253   : > { %2285 = vrcp.f32 %v556_v40  ;;  %v569_v9 = vand.u32 2147483648, %v556_v40  ;;  %v567_v12 = vand.u32 2147483647, %v556_v40  ;;  %vm563_vm8 = vweird.f32 %v556_v40 }
 0x254   : > { %v529_v43 = vpop.f32.mrf.mxu1  ;;  %v535_v44 = vpop.f32.mrf.mxu3 }
 0x255   : > { %v547_v46 = vsub.f32 %v529_v43, %v541_v16  ;;  %v549_v49 = vsub.f32 %v535_v44, %v543_v11  ;;  %v570_v55 = vor.u32 1.1754944e-38, %v569_v9  ;;  %vm568_vm10 = vcmp.eq.f32.partialorder %v567_v12, 8.507059e+37 }
 0x257   : > { %v555_v24 = vadd.f32 %v547_v46, %v545_v45  ;;  %v551_v6 = vmul.f32 2.0, %v549_v49 }
 0x259   : > { %v2286_v23 = vpop.eup %2285  ;;  %v557_v31 = vadd.f32 0.0009, %v555_v24  ;;  %v553_v18 = vadd.f32 0.0009, %v551_v6 }
 0x25a   : > { %v559_v41 = vmul.f32 %v2286_v23, %v556_v40  ;;  %vm564_vm7 = vweird.f32 %v2286_v23 }
 0x25b   : > { %2287 = vrcp.f32 %v557_v31  ;;  %vm565_vm9 = vmor %vm563_vm8, %vm564_vm7  ;;  %v583_v3 = vand.u32 2147483648, %v557_v31  ;;  %v581_v8 = vand.u32 2147483647, %v557_v31  ;;  %vm577_vm12 = vweird.f32 %v557_v31 }
 0x25c   : > { %v560_v17 = vsub.f32 1.0, %v559_v41  ;;  %v3072_v36 = vpop.f32.mrf.mxu0  ;;  %v3074_v22 = vpop.f32.mrf.mxu1 }
 0x25d   : > { %v3078_v50 = vmul.f32 %v3072_v36, %v3065_v30  ;;  %1601 = vrot.lane.b32.xlu0 %v3074_v22, %s2542_s27  ;;  %1597 = vrot.lane.b32.xlu1 %v3074_v22, %s2543_s29  ;;  %vm582_vm14 = vcmp.eq.f32.partialorder %v581_v8, 8.507059e+37  ;;  %v849_v38 = vmul.f32 %v3072_v36, %v3072_v36 }
 0x25e   : > { %v561_v48 = vmul.f32 %v2286_v23, %v560_v17  ;;  %2056 = vmatmul.msk.f32.vlgmr.msra.gmra.mxu1 %vm408_vm0, %v3074_v22 }
 0x260   : > { %v562_v52 = vadd.f32 %v2286_v23, %v561_v48  ;;  %v3086_v53 = vpop.f32.mrf.mxu3  ;;  %v3088_v35 = vpop.f32.mrf.mxu2 }
 0x261   : > { %v2288_v54 = vpop.eup %2287 }
 0x262   : > { %v566_v57 = vsel %vm565_vm9, %v2286_v23, %v562_v52  ;;  %v573_v58 = vmul.f32 %v2288_v54, %v557_v31  ;;  %vm578_vm11 = vweird.f32 %v2288_v54 }
 0x263   : > { %v571_v59 = vsel %vm568_vm10, %v570_v55, %v566_v57  ;;  %vm579_vm13 = vmor %vm577_vm12, %vm578_vm11 }
 0x264   : > { %v3090_v60 = vmul.f32 %v571_v59, %v552_v56  ;;  %v574_v61 = vsub.f32 1.0, %v573_v58  ;;  %v798_v62 = vpop.f32.mrf.mxu0  ;;  %v3092_v63 = vpop.f32.mrf.mxu1 }
 0x265   : > { %v852_v5 = vsub.f32 %v798_v62, %v846_v32  ;;  %1279 = vrot.lane.b32.xlu0 %v2933_v25, %s2540_s9  ;;  %716 = vrot.lane.b32.xlu1 %v2895_v42, %s2537_s21  ;;  %v847_v25 = vmul.f32 %v3065_v30, %v3065_v30  ;;  %v584_v42 = vor.u32 1.1754944e-38, %v583_v3  ;;  %v1276_v30 = vpop.permute.xlu1 %1275 }
 0x266   : > { %v575_v7 = vmul.f32 %v2288_v54, %v574_v61  ;;  %1599 = vrot.lane.b32.xlu2 %v3092_v63, %s2543_s29  ;;  %2057 = vmatmul.msk.f32.gmra.mxu1 %vm408_vm0, %v3092_v63  ;;  %v588_v48 = vmul.f32 %v3090_v60, %v3090_v60 }
 0x267   : > { %2044 = vmatmul.msk.f32.gmra.mxu2 %vm408_vm0, %v1276_v30 }
 0x268   : > { %v576_v13 = vadd.f32 %v2288_v54, %v575_v7  ;;  %v3102_v14 = vpop.f32.mrf.mxu3  ;;  %v3104_v15 = vpop.f32.mrf.mxu2  ;;  %v590_v62 = vmul.f32 %v588_v48, %v3090_v60 }
 0x26a   : > { %v580_v19 = vsel %vm579_vm13, %v2288_v54, %v576_v13 }
 0x26b   : > { %v585_v20 = vsel %vm582_vm14, %v584_v42, %v580_v19 }
 0x26c   : > { %v3108_v21 = vmul.f32 %v585_v20, %v553_v18  ;;  %v801_v29 = vpop.f32.mrf.mxu0 }
 0x26d   : > { %v853_v27 = vsub.f32 %v801_v29, %v847_v25  ;;  %1285 = vrot.lane.b32.xlu1 %v2947_v26, %s2537_s21  ;;  %1605 = vrot.lane.b32.xlu0 %v3074_v22, %s2539_s28 }
 0x26e   : > { %1277 = vrot.lane.b32.xlu2 %v2947_v26, %s2538_s23 }
 0x270   : > { %v1076_v28 = vpop.f32.mrf.mxu3  ;;  %v1353_v33 = vpop.f32.mrf.mxu2 }
 0x271   : > { %v1106_v3 = vmul.f32 %v1076_v28, %v1076_v28  ;;  %v1413_v25 = vmul.f32 %v1353_v33, %v1353_v33 }
 0x274   : > { %v804_v2 = vpop.f32.mrf.mxu0 }
 0x275   : > { %v854_v37 = vsub.f32 %v804_v2, %v848_v34  ;;  %1603 = vrot.lane.b32.xlu1 %v3092_v63, %s2542_s27  ;;  %722 = vrot.lane.b32.xlu0 %v3086_v53, %s2543_s29 }
 0x276   : > { %718 = vrot.lane.b32.xlu2 %v2907_v47, %s2537_s21 }
 0x277   : > { %v862_v1 = vadd.f32 %v854_v37, %v852_v5 }
 0x278   : > { %v3126_v4 = vpop.f32.mrf.mxu3  ;;  %v3128_v40 = vpop.f32.mrf.mxu2 }
 0x279   : > { %v864_v10 = vadd.f32 0.0009, %v862_v1  ;;  %v1414_v1 = vmul.f32 %v3128_v40, %v3128_v40 }
 0x27b   : > { %2289 = vrcp.f32 %v864_v10  ;;  %vm871_vm15 = vweird.f32 %v864_v10  ;;  %v875_v9 = vand.u32 2147483647, %v864_v10 }
 0x27c   : > { %v807_v16 = vpop.f32.mrf.mxu0 }
 0x27d   : > { %v855_v11 = vsub.f32 %v807_v16, %v849_v38  ;;  %1607 = vrot.lane.b32.xlu1 %v3092_v63, %s2539_s28  ;;  %724 = vrot.lane.b32.xlu0 %v3102_v14, %s2543_s29  ;;  %vm876_vm3 = vcmp.eq.f32.partialorder %v875_v9, 8.507059e+37 }
 0x27e   : > { %1281 = vrot.lane.b32.xlu2 %v2947_v26, %s2540_s9  ;;  %v877_v26 = vand.u32 2147483648, %v864_v10 }
 0x27f   : > { %v863_v47 = vadd.f32 %v855_v11, %v853_v27 }
 0x280   : > { %v3138_v43 = vpop.f32.mrf.mxu3  ;;  %v3140_v44 = vpop.f32.mrf.mxu2  ;;  %v878_v55 = vor.u32 1.1754944e-38, %v877_v26 }
 0x281   : > { %v2290_v45 = vpop.eup %2289  ;;  %v865_v46 = vadd.f32 0.0009, %v863_v47  ;;  %v3143_v49 = vmul.f32 %v3138_v43, %v1076_v28  ;;  %v3146_v23 = vmul.f32 %v3140_v44, %v1353_v33 }
 0x282   : > { %v867_v24 = vmul.f32 %v2290_v45, %v864_v10  ;;  %vm872_vm1 = vweird.f32 %v2290_v45 }
 0x283   : > { %2291 = vrcp.f32 %v865_v46  ;;  %vm873_vm2 = vmor %vm871_vm15, %vm872_vm1  ;;  %vm885_vm4 = vweird.f32 %v865_v46  ;;  %v891_v13 = vand.u32 2147483648, %v865_v46  ;;  %v889_v19 = vand.u32 2147483647, %v865_v46 }
 0x284   : > { %v810_v31 = vpop.f32.mrf.mxu0  ;;  %v868_v41 = vsub.f32 1.0, %v867_v24  ;;  %v1415_v24 = vmul.f32 %v3140_v44, %v3140_v44 }
 0x285   : > { %v856_v17 = vsub.f32 %v810_v31, %v3070_v39  ;;  %1609 = vrot.lane.b32.xlu1 %v3074_v22, %s2541_s26  ;;  %1615 = vrot.lane.b32.xlu0 %v3092_v63, %s2538_s23  ;;  %v892_v28 = vor.u32 1.1754944e-38, %v891_v13  ;;  %vm890_vm7 = vcmp.eq.f32.partialorder %v889_v19, 8.507059e+37 }
 0x286   : > { %v869_v36 = vmul.f32 %v2290_v45, %v868_v41  ;;  %1289 = vrot.lane.b32.xlu2 %v3088_v35, %s2543_s29 }
 0x287   : > { %v858_v51 = vmul.f32 2.0, %v856_v17 }
 0x288   : > { %v870_v12 = vadd.f32 %v2290_v45, %v869_v36  ;;  %v1085_v39 = vpop.f32.mrf.mxu3  ;;  %v1362_v52 = vpop.f32.mrf.mxu2 }
 0x289   : > { %v2292_v54 = vpop.eup %2291  ;;  %v860_v32 = vadd.f32 0.0009, %v858_v51  ;;  %v3158_v56 = vmul.f32 %v1085_v39, %v3126_v4  ;;  %v3161_v59 = vmul.f32 %v1362_v52, %v3128_v40  ;;  %v1109_v36 = vmul.f32 %v1085_v39, %v1085_v39 }
 0x28a   : > { %v881_v57 = vmul.f32 %v2292_v54, %v865_v46  ;;  %v874_v58 = vsel %vm873_vm2, %v2290_v45, %v870_v12  ;;  %vm886_vm5 = vweird.f32 %v2292_v54  ;;  %v1108_v46 = vmul.f32 %v3138_v43, %v3138_v43 }
 0x28b   : > { %v879_v61 = vsel %vm876_vm3, %v878_v55, %v874_v58  ;;  %vm887_vm6 = vmor %vm885_vm4, %vm886_vm5  ;;  %v1416_v9 = vmul.f32 %v1362_v52, %v1362_v52 }
 0x28c   : > { %v894_v5 = vmul.f32 %v879_v61, %v860_v32  ;;  %v813_v6 = vpop.f32.mrf.mxu0  ;;  %v882_v7 = vsub.f32 1.0, %v881_v57 }
 0x28d   : > { %v857_v8 = vsub.f32 %v813_v6, %v3078_v50  ;;  %1611 = vrot.lane.b32.xlu1 %v3092_v63, %s2541_s26  ;;  %v589_v63 = vmul.f32 %v3108_v21, %v3108_v21 }
 0x28e   : > { %v896_v42 = vmul.f32 %v894_v5, %v894_v5  ;;  %v883_v18 = vmul.f32 %v2292_v54, %v882_v7  ;;  %1291 = vrot.lane.b32.xlu2 %v3104_v15, %s2543_s29 }
 0x28f   : > { %v859_v60 = vmul.f32 2.0, %v857_v8  ;;  %v591_v38 = vmul.f32 %v589_v63, %v3108_v21 }
 0x290   : > { %v3169_v20 = vmul.f32 %v896_v42, %v590_v62  ;;  %v884_v29 = vadd.f32 %v2292_v54, %v883_v18  ;;  %v1088_v27 = vpop.f32.mrf.mxu3  ;;  %v1365_v30 = vpop.f32.mrf.mxu2 }
 0x291   : > { %v861_v50 = vadd.f32 0.0009, %v859_v60  ;;  %v1112_v33 = vsub.f32 %v1088_v27, %v1106_v3  ;;  %v1419_v34 = vsub.f32 %v1365_v30, %v1413_v25 }
 0x292   : > { %v888_v0 = vsel %vm887_vm6, %v2292_v54, %v884_v29 }
 0x293   : > { %v893_v2 = vsel %vm890_vm7, %v892_v28, %v888_v0 }
 0x294   : > { %v895_v37 = vmul.f32 %v893_v2, %v861_v50 }
 0x296   : > { %v897_v10 = vmul.f32 %v895_v37, %v895_v37  ;;  %1613 = vrot.lane.b32.xlu2 %v3074_v22, %s2538_s23  ;;  %v1107_v22 = vmul.f32 %v3126_v4, %v3126_v4 }
 0x298   : > { %v3179_v16 = vmul.f32 %v897_v10, %v591_v38  ;;  %v1091_v11 = vpop.f32.mrf.mxu3  ;;  %v1368_v47 = vpop.f32.mrf.mxu2 }
 0x299   : > { %v1420_v45 = vsub.f32 %v1368_v47, %v1414_v1  ;;  %v1113_v54 = vsub.f32 %v1091_v11, %v1107_v22 }
 0x2a0   : > { %v1094_v31 = vpop.f32.mrf.mxu3  ;;  %v1371_v41 = vpop.f32.mrf.mxu2 }
 0x2a1   : > { %v1114_v40 = vsub.f32 %v1094_v31, %v1108_v46  ;;  %v1421_v17 = vsub.f32 %v1371_v41, %v1415_v24 }
 0x2a3   : > { %v1122_v21 = vadd.f32 %v1114_v40, %v1112_v33  ;;  %v1429_v26 = vadd.f32 %v1421_v17, %v1419_v34 }
 0x2a5   : > { %v1124_v51 = vadd.f32 0.0009, %v1122_v21  ;;  %v1431_v48 = vadd.f32 0.0009, %v1429_v26 }
 0x2a7   : > { %2293 = vrcp.f32 %v1124_v51  ;;  %v1135_v6 = vand.u32 2147483647, %v1124_v51  ;;  %v1137_v7 = vand.u32 2147483648, %v1124_v51  ;;  %v1442_v18 = vand.u32 2147483647, %v1431_v48 }
 0x2a8   : > { %v1097_v12 = vpop.f32.mrf.mxu3  ;;  %2295 = vrcp.f32 %v1431_v48  ;;  %v1374_v43 = vpop.f32.mrf.mxu2  ;;  %vm1131_vm8 = vweird.f32 %v1124_v51  ;;  %v1444_v60 = vand.u32 2147483648, %v1431_v48  ;;  %vm1438_vm12 = vweird.f32 %v1431_v48 }
 0x2a9   : > { %v1115_v32 = vsub.f32 %v1097_v12, %v1109_v36  ;;  %v1422_v44 = vsub.f32 %v1374_v43, %v1416_v9  ;;  %vm1136_vm11 = vcmp.eq.f32.partialorder %v1135_v6, 8.507059e+37  ;;  %v1138_v28 = vor.u32 1.1754944e-38, %v1137_v7 }
 0x2aa   : > { %vm1443_vm14 = vcmp.eq.f32.partialorder %v1442_v18, 8.507059e+37  ;;  %v1445_v1 = vor.u32 1.1754944e-38, %v1444_v60 }
 0x2ab   : > { %v1123_v55 = vadd.f32 %v1115_v32, %v1113_v54  ;;  %v1430_v57 = vadd.f32 %v1422_v44, %v1420_v45 }
 0x2ad   : > { %v2294_v58 = vpop.eup %2293  ;;  %v3187_v61 = vadd.f32 0.0009, %v1123_v55  ;;  %v3189_v62 = vadd.f32 0.0009, %v1430_v57 }
 0x2ae   : > { %v2296_v3 = vpop.eup %2295  ;;  %v1127_v4 = vmul.f32 %v2294_v58, %v1124_v51  ;;  %vm1132_vm9 = vweird.f32 %v2294_v58 }
 0x2af   : > { %2297 = vrcp.f32 %v3187_v61  ;;  %v1434_v39 = vmul.f32 %v2296_v3, %v1431_v48  ;;  %vm1439_vm10 = vweird.f32 %v2296_v3  ;;  %vm1133_vm13 = vmor %vm1131_vm8, %vm1132_vm9  ;;  %v1149_v37 = vand.u32 2147483647, %v3187_v61 }
 0x2b0   : > { %v1100_v52 = vpop.f32.mrf.mxu3  ;;  %v1128_v5 = vsub.f32 1.0, %v1127_v4  ;;  %2299 = vrcp.f32 %v3189_v62  ;;  %v1377_v8 = vpop.f32.mrf.mxu2  ;;  %vm1440_vm15 = vmor %vm1438_vm12, %vm1439_vm10  ;;  %v1151_v10 = vand.u32 2147483648, %v3187_v61  ;;  %vm1452_vm1 = vweird.f32 %v3189_v62 }
 0x2b1   : > { %v1116_v13 = vsub.f32 %v1100_v52, %v3143_v49  ;;  %v1423_v25 = vsub.f32 %v1377_v8, %v3146_v23  ;;  %v1435_v42 = vsub.f32 1.0, %v1434_v39  ;;  %v1456_v36 = vand.u32 2147483647, %v3189_v62 }
 0x2b2   : > { %v1129_v19 = vmul.f32 %v2294_v58, %v1128_v5  ;;  %v1458_v9 = vand.u32 2147483648, %v3189_v62  ;;  %vm1145_vm4 = vweird.f32 %v3187_v61  ;;  %vm1150_vm6 = vcmp.eq.f32.partialorder %v1149_v37, 8.507059e+37 }
 0x2b3   : > { %v1118_v29 = vmul.f32 2.0, %v1116_v13  ;;  %v1425_v27 = vmul.f32 2.0, %v1423_v25  ;;  %v1436_v30 = vmul.f32 %v2296_v3, %v1435_v42  ;;  %vm1457_vm8 = vcmp.eq.f32.partialorder %v1456_v36, 8.507059e+37 }
 0x2b4   : > { %v1130_v50 = vadd.f32 %v2294_v58, %v1129_v19  ;;  %v1459_v55 = vor.u32 1.1754944e-38, %v1458_v9 }
 0x2b5   : > { %v2298_v33 = vpop.eup %2297  ;;  %v1120_v34 = vadd.f32 0.0009, %v1118_v29  ;;  %v1427_v49 = vadd.f32 0.0009, %v1425_v27  ;;  %v1437_v63 = vadd.f32 %v2296_v3, %v1436_v30 }
 0x2b6   : > { %v2300_v23 = vpop.eup %2299  ;;  %v1141_v0 = vmul.f32 %v2298_v33, %v3187_v61  ;;  %v1134_v2 = vsel %vm1133_vm13, %v2294_v58, %v1130_v50  ;;  %vm1146_vm2 = vweird.f32 %v2298_v33  ;;  %v816_v50 = vpop.f32.mrf.mxu0 }
 0x2b7   : > { %v1139_v38 = vsel %vm1136_vm11, %v1138_v28, %v1134_v2  ;;  %v1448_v11 = vmul.f32 %v2300_v23, %v3189_v62  ;;  %v1441_v47 = vsel %vm1440_vm15, %v2296_v3, %v1437_v63  ;;  %vm1453_vm3 = vweird.f32 %v2300_v23  ;;  %vm1147_vm5 = vmor %vm1145_vm4, %vm1146_vm2 }
 0x2b8   : > { %v3200_v45 = vmul.f32 %v1139_v38, %v1120_v34  ;;  %v1103_v46 = vpop.f32.mrf.mxu3  ;;  %v1142_v24 = vsub.f32 1.0, %v1141_v0  ;;  %v1446_v31 = vsel %vm1443_vm14, %v1445_v1, %v1441_v47  ;;  %v1380_v41 = vpop.f32.mrf.mxu2  ;;  %vm1454_vm7 = vmor %vm1452_vm1, %vm1453_vm3 }
 0x2b9   : > { %v1117_v40 = vsub.f32 %v1103_v46, %v3158_v56  ;;  %v3204_v17 = vmul.f32 %v1446_v31, %v1427_v49  ;;  %v1424_v21 = vsub.f32 %v1380_v41, %v3161_v59  ;;  %v1449_v26 = vsub.f32 1.0, %v1448_v11 }
 0x2ba   : > { %v1143_v22 = vmul.f32 %v2298_v33, %v1142_v24  ;;  %v1152_v56 = vor.u32 1.1754944e-38, %v1151_v10 }
 0x2bb   : > { %v1119_v51 = vmul.f32 2.0, %v1117_v40  ;;  %v1426_v48 = vmul.f32 2.0, %v1424_v21  ;;  %v1450_v12 = vmul.f32 %v2300_v23, %v1449_v26 }
 0x2bc   : > { %v1144_v43 = vadd.f32 %v2298_v33, %v1143_v22 }
 0x2bd   : > { %v1121_v54 = vadd.f32 0.0009, %v1119_v51  ;;  %v1428_v32 = vadd.f32 0.0009, %v1426_v48  ;;  %v1451_v44 = vadd.f32 %v2300_v23, %v1450_v12  ;;  %v1156_v12 = vmul.f32 %v3200_v45, %v3200_v45 }
 0x2be   : > { %v1148_v59 = vsel %vm1147_vm5, %v2298_v33, %v1144_v43  ;;  %v819_v28 = vpop.f32.mrf.mxu0  ;;  %v900_v43 = vmul.f32 %v816_v50, %v816_v50 }
 0x2bf   : > { %v1153_v57 = vsel %vm1150_vm6, %v1152_v56, %v1148_v59  ;;  %v1455_v58 = vsel %vm1454_vm7, %v2300_v23, %v1451_v44 }
 0x2c0   : > { %v1600_v3 = vpop.permute.xlu2 %1599  ;;  %v3212_v4 = vmul.f32 %v1153_v57, %v1121_v54  ;;  %v1460_v39 = vsel %vm1457_vm8, %v1459_v55, %v1455_v58 }
 0x2c1   : > { %v3214_v52 = vmul.f32 %v1460_v39, %v1428_v32 }
 0x2c2   : > { %v1157_v57 = vmul.f32 %v3212_v4, %v3212_v4 }
 0x2c6   : > { %v822_v34 = vpop.f32.mrf.mxu0 }
 0x2c7   : > { %v902_v54 = vmul.f32 %v822_v34, %v822_v34 }
 0x2c8   : > { %v1278_v61 = vpop.permute.xlu2 %1277 }
 0x2c9   : > { %2045 = vmatmul.msk.f32.gmra.mxu2 %vm408_vm0, %v1278_v61 }
 0x2ce   : > { %v825_v63 = vpop.f32.mrf.mxu0 }
 0x2cf   : > { %v1602_v5 = vpop.permute.xlu0 %1601  ;;  %v1598_v6 = vpop.permute.xlu1 %1597 }
 0x2d0   : > { %2058 = vmatmul.msk.f32.gmra.mxu1 %vm408_vm0, %v1598_v6  ;;  %v719_v7 = vpop.permute.xlu2 %718 }
 0x2d1   : > { %v3262_v26 = vpop.f32.mrf.mxu3 }
 0x2d7   : > { %v1280_v62 = vpop.permute.xlu0 %1279  ;;  %v717_v8 = vpop.permute.xlu1 %716 }
 0x2d8   : > { %2012 = vmatmul.msk.f32.gmra.mxu0 %vm408_vm0, %v717_v8  ;;  %2046 = vmatmul.msk.f32.gmra.mxu2 %vm408_vm0, %v1280_v62  ;;  %v1282_v13 = vpop.permute.xlu2 %1281  ;;  %v3285_v62 = vmul.f32 %v822_v34, %v816_v50 }
 0x2d9   : > { %2059 = vmatmul.msk.f32.gmra.mxu1 %vm408_vm0, %v1600_v3 }
 0x2db   : > { %v1661_v33 = vpop.f32.mrf.mxu1 }
 0x2dc   : > { %v3244_v0 = vmul.f32 %v1661_v33, %v1661_v33 }
 0x2df   : > { %v1286_v25 = vpop.permute.xlu1 %1285  ;;  %v1606_v18 = vpop.permute.xlu0 %1605 }
 0x2e0   : > { %2013 = vmatmul.msk.f32.gmra.mxu0 %vm408_vm0, %v719_v7  ;;  %2047 = vmatmul.msk.f32.gmra.mxu2 %vm408_vm0, %v1282_v13  ;;  %v1290_v29 = vpop.permute.xlu2 %1289 }
 0x2e1   : > { %2049 = vmatmul.msk.f32.gmra.mxu3 %vm408_vm0, %v1286_v25  ;;  %2060 = vmatmul.msk.f32.gmra.mxu1 %vm408_vm0, %v1602_v5 }
 0x2e3   : > { %v1664_v49 = vpop.f32.mrf.mxu1 }
 0x2e4   : > { %v3252_v47 = vmul.f32 %v1664_v49, %v1664_v49 }
 0x2e7   : > { %v1604_v42 = vpop.permute.xlu1 %1603  ;;  %v723_v60 = vpop.permute.xlu0 %722 }
 0x2e8   : > { %2014 = vmatmul.msk.f32.gmra.mxu0 %vm408_vm0, %v3086_v53  ;;  %v1292_v27 = vpop.permute.xlu2 %1291 }
 0x2e9   : > { %2050 = vmatmul.msk.f32.gmra.mxu3 %vm408_vm0, %v3088_v35  ;;  %2061 = vmatmul.msk.f32.gmra.mxu1 %vm408_vm0, %v1604_v42  ;;  %v3294_v42 = vmul.f32 %v1156_v12, %v3200_v45 }
 0x2ea   : > { %v3250_v38 = vpop.f32.mrf.mxu2 }
 0x2eb   : > { %v1465_v8 = vmul.f32 %v3250_v38, %v3250_v38 }
 0x2ed   : > { %v1471_v45 = vsub.f32 %v3262_v26, %v1465_v8 }
 0x2ef   : > { %v1608_v19 = vpop.permute.xlu1 %1607  ;;  %v725_v35 = vpop.permute.xlu0 %724 }
 0x2f0   : > { %2015 = vmatmul.msk.f32.gmra.mxu0 %vm408_vm0, %v3102_v14 }
 0x2f1   : > { %2051 = vmatmul.msk.f32.gmra.mxu3 %vm408_vm0, %v3104_v15  ;;  %2062 = vmatmul.msk.f32.gmra.mxu1 %vm408_vm0, %v1606_v18  ;;  %v1614_v15 = vpop.permute.xlu2 %1613 }
 0x2f7   : > { %v1610_v53 = vpop.permute.xlu1 %1609  ;;  %v1616_v30 = vpop.permute.xlu0 %1615 }
 0x2f8   : > { %2016 = vmatmul.msk.f32.gmra.mxu0 %vm408_vm0, %v723_v60 }
 0x2f9   : > { %2052 = vmatmul.msk.f32.gmra.mxu3 %vm408_vm0, %v1290_v29  ;;  %2063 = vmatmul.msk.f32.gmra.mxu1 %vm408_vm0, %v1608_v19  ;;  %v901_v29 = vmul.f32 %v819_v28, %v819_v28 }
 0x2ff   : > { %v1612_v14 = vpop.permute.xlu1 %1611 }
 0x300   : > { %2017 = vmatmul.msk.f32.gmra.mxu0 %vm408_vm0, %v725_v35 }
 0x301   : > { %2053 = vmatmul.msk.f32.gmra.mxu3 %vm408_vm0, %v1292_v27  ;;  %2064 = vmatmul.msk.f32.gmra.mxu1 %vm408_vm0, %v1610_v53  ;;  %v3299_v53 = vmul.f32 %v825_v63, %v819_v28 }
 0x309   : > { %2065 = vmatmul.msk.f32.gmra.mxu1 %vm408_vm0, %v1612_v14  ;;  %v3303_v14 = vmul.f32 %v1157_v57, %v3212_v4 }
 0x311   : > { %2066 = vmatmul.msk.f32.gmra.mxu1 %vm408_vm0, %v1614_v15  ;;  %v903_v15 = vmul.f32 %v825_v63, %v825_v63 }
 0x319   : > { %2067 = vmatmul.msk.f32.gmra.mxu1 %vm408_vm0, %v1616_v30 }
 0x34c   : > { %v3258_v41 = vpop.f32.mrf.mxu2 }
 0x34d   : > { %v1667_v23 = vpop.f32.mrf.mxu1  ;;  %v1466_v28 = vmul.f32 %v3258_v41, %v3258_v41 }
 0x34e   : > { %v3246_v2 = vmul.f32 %v1667_v23, %v1667_v23  ;;  %v3273_v32 = vmul.f32 %v1667_v23, %v1661_v33 }
 0x350   : > { %v1757_v37 = vadd.f32 %v3246_v2, %v3244_v0  ;;  %v1753_v18 = vmul.f32 2.0, %v3273_v32 }
 0x352   : > { %v1759_v1 = vadd.f32 0.0001, %v1757_v37 }
 0x354   : > { %2301 = vrcp.f32 %v1759_v1  ;;  %v1772_v58 = vand.u32 2147483648, %v1759_v1  ;;  %vm1766_vm10 = vweird.f32 %v1759_v1  ;;  %v1770_v61 = vand.u32 2147483647, %v1759_v1 }
 0x355   : > { %v828_v10 = vpop.f32.mrf.mxu0 }
 0x356   : > { %v1670_v11 = vpop.f32.mrf.mxu1  ;;  %v906_v5 = vsub.f32 %v828_v10, %v900_v43  ;;  %v1773_v35 = vor.u32 1.1754944e-38, %v1772_v58  ;;  %vm1771_vm12 = vcmp.eq.f32.partialorder %v1770_v61, 8.507059e+37 }
 0x357   : > { %v3254_v46 = vmul.f32 %v1670_v11, %v1670_v11  ;;  %v3281_v3 = vmul.f32 %v1670_v11, %v1664_v49  ;;  %v1755_v49 = vadd.f32 0.0001, %v1753_v18 }
 0x359   : > { %v1758_v24 = vadd.f32 %v3254_v46, %v3252_v47  ;;  %v1754_v27 = vmul.f32 2.0, %v3281_v3 }
 0x35a   : > { %v2302_v31 = vpop.eup %2301 }
 0x35b   : > { %v1762_v40 = vmul.f32 %v2302_v31, %v1759_v1  ;;  %v3260_v21 = vadd.f32 0.0001, %v1758_v24  ;;  %v1389_v56 = vpop.f32.mrf.mxu2  ;;  %vm1767_vm9 = vweird.f32 %v2302_v31  ;;  %v3313_v37 = vadd.f32 0.0001, %v1754_v27 }
 0x35c   : > { %vm3289_vm11 = vmor %vm1766_vm10, %vm1767_vm9  ;;  %v1467_v34 = vmul.f32 %v1389_v56, %v1389_v56  ;;  %v3317_v63 = vmul.f32 %v1389_v56, %v3250_v38 }
 0x35d   : > { %v1763_v22 = vsub.f32 1.0, %v1762_v40  ;;  %2303 = vrcp.f32 %v3260_v21  ;;  %v3265_v36 = vpop.f32.mrf.mxu0  ;;  %v1786_v23 = vand.u32 2147483648, %v3260_v21  ;;  %vm1780_vm13 = vweird.f32 %v3260_v21 }
 0x35e   : > { %v3267_v9 = vpop.f32.mrf.mxu1  ;;  %v1784_v43 = vand.u32 2147483647, %v3260_v21 }
 0x35f   : > { %v1764_v51 = vmul.f32 %v2302_v31, %v1763_v22  ;;  %v1703_v40 = vsub.f32 %v3267_v9, %v3244_v0 }
 0x361   : > { %v1765_v44 = vadd.f32 %v2302_v31, %v1764_v51 }
 0x363   : > { %v3269_v48 = vpop.eup %2303  ;;  %v1769_v19 = vsel %vm3289_vm11, %v2302_v31, %v1765_v44  ;;  %v1392_v1 = vpop.f32.mrf.mxu2  ;;  %v907_v31 = vsub.f32 %v3265_v36, %v901_v29 }
 0x364   : > { %v1776_v59 = vmul.f32 %v3269_v48, %v3260_v21  ;;  %v3277_v55 = vpop.f32.mrf.mxu3  ;;  %v1774_v50 = vsel %vm1771_vm12, %v1773_v35, %v1769_v19  ;;  %vm1781_vm14 = vweird.f32 %v3269_v48  ;;  %v1468_v56 = vmul.f32 %v1392_v1, %v1392_v1 }
 0x365   : > { %v834_v39 = vpop.f32.mrf.mxu0  ;;  %v3319_v24 = vmul.f32 %v1774_v50, %v1755_v49  ;;  %v3333_v36 = vmul.f32 %v1392_v1, %v3258_v41  ;;  %vm3344_vm15 = vmor %vm1780_vm13, %vm1781_vm14 }
 0x366   : > { %v908_v6 = vsub.f32 %v834_v39, %v902_v54  ;;  %v3283_v7 = vpop.f32.mrf.mxu1  ;;  %v1777_v25 = vsub.f32 1.0, %v1776_v59  ;;  %v3330_v54 = vor.u32 1.1754944e-38, %v1786_v23  ;;  %v1472_v39 = vsub.f32 %v3277_v55, %v1466_v28 }
 0x367   : > { %v3340_v58 = vmul.f32 %v3319_v24, %v3319_v24  ;;  %v1704_v41 = vsub.f32 %v3283_v7, %v3252_v47 }
 0x368   : > { %v916_v60 = vadd.f32 %v908_v6, %v906_v5  ;;  %v1778_v33 = vmul.f32 %v3269_v48, %v1777_v25 }
 0x36a   : > { %v3305_v30 = vadd.f32 0.0009, %v916_v60  ;;  %v3325_v51 = vadd.f32 %v3269_v48, %v1778_v33 }
 0x36c   : > { %2305 = vrcp.f32 %v3305_v30  ;;  %v1401_v4 = vpop.f32.mrf.mxu3  ;;  %v929_v59 = vand.u32 2147483647, %v3305_v30  ;;  %v1783_v5 = vsel %vm3344_vm15, %v3269_v48, %v3325_v51  ;;  %vm925_vm1 = vweird.f32 %v3305_v30 }
 0x36d   : > { %v1473_v10 = vsub.f32 %v1401_v4, %v1467_v34  ;;  %v837_v11 = vpop.f32.mrf.mxu0  ;;  %v931_v47 = vand.u32 2147483648, %v3305_v30 }
 0x36e   : > { %v909_v26 = vsub.f32 %v837_v11, %v903_v15  ;;  %v1679_v22 = vpop.f32.mrf.mxu1  ;;  %vm3366_vm2 = vcmp.eq.f32.partialorder %v929_v59, 8.507059e+37 }
 0x36f   : > { %v1481_v12 = vadd.f32 %v1473_v10, %v1471_v45  ;;  %v1705_v38 = vsub.f32 %v1679_v22, %v3246_v2  ;;  %v932_v28 = vor.u32 1.1754944e-38, %v931_v47 }
 0x370   : > { %v917_v44 = vadd.f32 %v909_v26, %v907_v31 }
 0x371   : > { %v3335_v0 = vadd.f32 0.0009, %v1481_v12  ;;  %v1713_v9 = vadd.f32 %v1705_v38, %v1703_v40 }
 0x372   : > { %v2306_v57 = vpop.eup %2305  ;;  %v3351_v61 = vadd.f32 0.0009, %v917_v44 }
 0x373   : > { %v921_v6 = vmul.f32 %v2306_v57, %v3305_v30  ;;  %2307 = vrcp.f32 %v3335_v0  ;;  %v3359_v8 = vadd.f32 0.0009, %v1713_v9  ;;  %v1496_v55 = vand.u32 2147483648, %v3335_v0 }
 0x374   : > { %2309 = vrcp.f32 %v3351_v61  ;;  %v1404_v13 = vpop.f32.mrf.mxu3  ;;  %vm926_vm3 = vweird.f32 %v2306_v57  ;;  %v1494_v35 = vand.u32 2147483647, %v3335_v0  ;;  %v943_v27 = vand.u32 2147483647, %v3351_v61 }
 0x375   : > { %2311 = vrcp.f32 %v3359_v8  ;;  %v1474_v7 = vsub.f32 %v1404_v13, %v1468_v56  ;;  %v840_v25 = vpop.f32.mrf.mxu0  ;;  %v922_v18 = vsub.f32 1.0, %v921_v6  ;;  %v945_v33 = vand.u32 2147483648, %v3351_v61  ;;  %vm927_vm6 = vmor %vm925_vm1, %vm926_vm3 }
 0x376   : > { %v910_v60 = vsub.f32 %v840_v25, %v3285_v62  ;;  %v1682_v29 = vpop.f32.mrf.mxu1  ;;  %vm1490_vm4 = vweird.f32 %v3335_v0  ;;  %v1497_v49 = vor.u32 1.1754944e-38, %v1496_v55  ;;  %vm939_vm5 = vweird.f32 %v3351_v61 }
 0x377   : > { %v1482_v15 = vadd.f32 %v1474_v7, %v1472_v39  ;;  %v923_v45 = vmul.f32 %v2306_v57, %v922_v18  ;;  %v1706_v50 = vsub.f32 %v1682_v29, %v3254_v46  ;;  %v1726_v10 = vand.u32 2147483647, %v3359_v8 }
 0x378   : > { %v912_v34 = vmul.f32 2.0, %v910_v60  ;;  %vm3384_vm8 = vcmp.eq.f32.partialorder %v1494_v35, 8.507059e+37  ;;  %v946_v26 = vor.u32 1.1754944e-38, %v945_v33  ;;  %vm1722_vm9 = vweird.f32 %v3359_v8 }
 0x379   : > { %v2308_v23 = vpop.eup %2307  ;;  %v3376_v4 = vadd.f32 0.0009, %v1482_v15  ;;  %v924_v62 = vadd.f32 %v2306_v57, %v923_v45  ;;  %v1714_v1 = vadd.f32 %v1706_v50, %v1704_v41  ;;  %vm3395_vm10 = vcmp.eq.f32.partialorder %v943_v27, 8.507059e+37 }
 0x37a   : > { %v2310_v11 = vpop.eup %2309  ;;  %v1486_v31 = vmul.f32 %v2308_v23, %v3335_v0  ;;  %v914_v46 = vadd.f32 0.0009, %v912_v34  ;;  %vm1491_vm7 = vweird.f32 %v2308_v23  ;;  %vm3437_vm3 = vcmp.eq.f32.partialorder %v1784_v43, 8.507059e+37 }
 0x37b   : > { %v3389_v22 = vpop.eup %2311  ;;  %v935_v12 = vmul.f32 %v2310_v11, %v3351_v61  ;;  %2313 = vrcp.f32 %v3376_v4  ;;  %v928_v38 = vsel %vm927_vm6, %v2306_v57, %v924_v62  ;;  %v3393_v56 = vadd.f32 0.0009, %v1714_v1  ;;  %vm1492_vm13 = vmor %vm1490_vm4, %vm1491_vm7 }
 0x37c   : > { %v1718_v44 = vmul.f32 %v3389_v22, %v3359_v8  ;;  %v933_v9 = vsel %vm3366_vm2, %v932_v28, %v928_v38  ;;  %v1407_v59 = vpop.f32.mrf.mxu3  ;;  %v1487_v39 = vsub.f32 1.0, %v1486_v31  ;;  %vm940_vm11 = vweird.f32 %v2310_v11 }
 0x37d   : > { %v948_v41 = vmul.f32 %v933_v9, %v914_v46  ;;  %2315 = vrcp.f32 %v3393_v56  ;;  %v1475_v57 = vsub.f32 %v1407_v59, %v3317_v63  ;;  %v843_v6 = vpop.f32.mrf.mxu0  ;;  %v936_v13 = vsub.f32 1.0, %v935_v12  ;;  %vm941_vm14 = vmor %vm939_vm5, %vm940_vm11 }
 0x37e   : > { %v1488_v47 = vmul.f32 %v2308_v23, %v1487_v39  ;;  %v911_v55 = vsub.f32 %v843_v6, %v3299_v53  ;;  %v1685_v7 = vpop.f32.mrf.mxu1  ;;  %v1719_v25 = vsub.f32 1.0, %v1718_v44  ;;  %vm1723_vm12 = vweird.f32 %v3389_v22 }
 0x37f   : > { %v950_v18 = vmul.f32 %v948_v41, %v3169_v20  ;;  %v1477_v19 = vmul.f32 2.0, %v1475_v57  ;;  %v937_v60 = vmul.f32 %v2310_v11, %v936_v13  ;;  %v1707_v29 = vsub.f32 %v1685_v7, %v3273_v32  ;;  %vm3427_vm1 = vmor %vm1722_vm9, %vm1723_vm12 }
 0x380   : > { %v1489_v35 = vadd.f32 %v2308_v23, %v1488_v47  ;;  %v913_v27 = vmul.f32 2.0, %v911_v55  ;;  %v1720_v15 = vmul.f32 %v3389_v22, %v1719_v25  ;;  %v1728_v63 = vand.u32 2147483648, %v3359_v8 }
 0x381   : > { %v2314_v45 = vpop.eup %2313  ;;  %v1160_v50 = vmul.f32 %v3294_v42, %v950_v18  ;;  %v1479_v53 = vadd.f32 0.0009, %v1477_v19  ;;  %v938_v33 = vadd.f32 %v2310_v11, %v937_v60  ;;  %v1709_v20 = vmul.f32 2.0, %v1707_v29 }
 0x382   : > { %v1500_v34 = vmul.f32 %v2314_v45, %v3376_v4  ;;  %v1493_v28 = vsel %vm1492_vm13, %v2308_v23, %v1489_v35  ;;  %v915_v32 = vadd.f32 0.0009, %v913_v27  ;;  %v1721_v62 = vadd.f32 %v3389_v22, %v1720_v15 }
 0x383   : > { %v2316_v1 = vpop.eup %2315  ;;  %v1463_v42 = vmul.f32 %v3204_v17, %v1160_v50  ;;  %v1498_v31 = vsel %vm3384_vm8, %v1497_v49, %v1493_v28  ;;  %v942_v0 = vsel %vm941_vm14, %v2310_v11, %v938_v33  ;;  %vm3431_vm2 = vcmp.eq.f32.partialorder %v1726_v10, 8.507059e+37 }
 0x384   : > { %v1513_v49 = vmul.f32 %v1498_v31, %v1479_v53  ;;  %v947_v11 = vsel %vm3395_vm10, %v946_v26, %v942_v0  ;;  %v1711_v46 = vadd.f32 0.0009, %v1709_v20  ;;  %v1725_v8 = vsel %vm3427_vm1, %v3389_v22, %v1721_v62  ;;  %v1410_v40 = vpop.f32.mrf.mxu3 }
 0x385   : > { %v949_v10 = vmul.f32 %v947_v11, %v915_v32  ;;  %v1729_v12 = vor.u32 1.1754944e-38, %v1728_v63  ;;  %v1476_v38 = vsub.f32 %v1410_v40, %v3333_v36  ;;  %v1501_v44 = vsub.f32 1.0, %v1500_v34 }
 0x386   : > { %v1732_v21 = vmul.f32 %v2316_v1, %v3393_v56  ;;  %v1515_v43 = vmul.f32 %v1513_v49, %v1513_v49  ;;  %vm1505_vm4 = vweird.f32 %v2314_v45  ;;  %v1508_v9 = vand.u32 2147483647, %v3376_v4  ;;  %v1688_v59 = vpop.f32.mrf.mxu1 }
 0x387   : > { %v951_v26 = vmul.f32 %v949_v10, %v3179_v16  ;;  %v1730_v30 = vsel %vm3431_vm2, %v1729_v12, %v1725_v8  ;;  %v1478_v39 = vmul.f32 2.0, %v1476_v38  ;;  %v1502_v22 = vmul.f32 %v2314_v45, %v1501_v44 }
 0x388   : > { %v1517_v41 = vmul.f32 %v1515_v43, %v1463_v42  ;;  %v1745_v57 = vmul.f32 %v1730_v30, %v1711_v46  ;;  %vm1504_vm5 = vweird.f32 %v3376_v4  ;;  %v1510_v36 = vand.u32 2147483648, %v3376_v4 }
 0x389   : > { %v1161_v6 = vmul.f32 %v3303_v14, %v951_v26  ;;  %v1503_v13 = vadd.f32 %v2314_v45, %v1502_v22  ;;  %vm1509_vm6 = vcmp.eq.f32.partialorder %v1508_v9, 8.507059e+37  ;;  %v1708_v47 = vsub.f32 %v1688_v59, %v3281_v3  ;;  %vm1506_vm7 = vmor %vm1504_vm5, %vm1505_vm4 }
 0x38a   : > { %v1747_v55 = vmul.f32 %v1745_v57, %v1745_v57  ;;  %v1480_v7 = vadd.f32 0.0009, %v1478_v39  ;;  %v1511_v16 = vor.u32 1.1754944e-38, %v1510_v36  ;;  %v1733_v25 = vsub.f32 1.0, %v1732_v21 }
 0x38b   : > { %v1464_v18 = vmul.f32 %v3214_v52, %v1161_v6  ;;  %v1507_v19 = vsel %vm1506_vm7, %v2314_v45, %v1503_v13  ;;  %v1710_v60 = vmul.f32 2.0, %v1708_v47  ;;  %vm1737_vm8 = vweird.f32 %v2316_v1 }
 0x38c   : > { %v1749_v29 = vmul.f32 %v1747_v55, %v1745_v57  ;;  %v1512_v35 = vsel %vm1509_vm6, %v1511_v16, %v1507_v19  ;;  %v1734_v4 = vmul.f32 %v2316_v1, %v1733_v25  ;;  %v1740_v14 = vand.u32 2147483647, %v3393_v56 }
 0x38d   : > { %v1788_v3 = vsel %vm3437_vm3, %v3330_v54, %v1783_v5  ;;  %vm1736_vm9 = vweird.f32 %v3393_v56  ;;  %v1742_v52 = vand.u32 2147483648, %v3393_v56  ;;  %v1793_v27 = vmul.f32 %v3340_v58, %v3319_v24 }
 0x38e   : > { %v1514_v15 = vmul.f32 %v1512_v35, %v1480_v7  ;;  %v1712_v63 = vadd.f32 0.0009, %v1710_v60  ;;  %v1735_v45 = vadd.f32 %v2316_v1, %v1734_v4  ;;  %v1751_v50 = vmul.f32 %v1749_v29, %v1517_v41  ;;  %vm1738_vm10 = vmor %vm1736_vm9, %vm1737_vm8  ;;  %v1691_v54 = vpop.f32.mrf.mxu1 }
 0x38f   : > { %v1743_v2 = vor.u32 1.1754944e-38, %v1742_v52  ;;  %v1790_v53 = vmul.f32 %v1788_v3, %v3313_v37  ;;  %vm1741_vm15 = vcmp.eq.f32.partialorder %v1740_v14, 8.507059e+37  ;;  %v1801_v23 = vmul.f32 0.975, %v1691_v54 }
 0x390   : > { %v1739_v48 = vsel %vm1738_vm10, %v2316_v1, %v1735_v45  ;;  %v1795_v51 = vmul.f32 %v1793_v27, %v1751_v50  ;;  %v1516_v5 = vmul.f32 %v1514_v15, %v1514_v15 }
 0x391   : > { %v1744_v33 = vsel %vm1741_vm15, %v1743_v2, %v1739_v48  ;;  %v1792_v34 = vmul.f32 %v1790_v53, %v1790_v53 }
 0x392   : > { %v1746_v20 = vmul.f32 %v1744_v33, %v1712_v63  ;;  %v1518_v28 = vmul.f32 %v1516_v5, %v1464_v18  ;;  %v1797_v24 = vsub.f32 1.0, %v1795_v51 }
 0x393   : > { %v1794_v62 = vmul.f32 %v1792_v34, %v1790_v53 }
 0x394   : > { %v1748_v56 = vmul.f32 %v1746_v20, %v1746_v20  ;;  %v1799_v42 = vmul.f32 0.025, %v1797_v24 }
 0x396   : > { %v1750_v32 = vmul.f32 %v1748_v56, %v1746_v20  ;;  %v1694_v0 = vpop.f32.mrf.mxu1  ;;  %v1803_v37 = vadd.f32 %v1801_v23, %v1799_v42 }
 0x397   : > { %v1802_v17 = vmul.f32 0.975, %v1694_v0 }
 0x398   : > { %v1752_v58 = vmul.f32 %v1750_v32, %v1518_v28  ;;  %v1805_v11 = vsel %vm408_vm0, %v1803_v37, 0.0 }
 0x39a   : > { %v1796_v31 = vmul.f32 %v1794_v62, %v1752_v58 }
 0x39c   : > { %v1798_v61 = vsub.f32 1.0, %v1796_v31 }
 0x39e   : > { %v1800_v1 = vmul.f32 0.025, %v1798_v61 }
 0x3a0   : > { %v1804_v49 = vadd.f32 %v1802_v17, %v1800_v1 }
 0x3a2   : > { %v1806_v46 = vsel %vm408_vm0, %v1804_v49, 0.0 }
 0x3a3   : > { %v1807_v8 = vadd.f32 %v1806_v46, %v1805_v11 }
 0x3a5   : > { %1808 = vadd.xlane.f32.xlu1 %v1807_v8 }
 0x418   : > { %v1809_v40 = vpop.xlane.xlu1 %1808 }
 0x419   : > { %v1810_v10 = vrot.slane %v1809_v40, 4 }
 0x41b   : > { %v1811_v12 = vadd.f32 %v1810_v10, %v1809_v40 }
 0x41d   : > { %v1812_v38 = vrot.slane %v1811_v12, 2 }
 0x41f   : > { %v1813_v44 = vadd.f32 %v1812_v38, %v1811_v12 }
 0x421   : > { %v1814_v21 = vrot.slane %v1813_v44, 1 }
 0x423   : > { %v1815_v43 = vadd.f32 %v1814_v21, %v1813_v44 }
 0x425   : > { %2081 = vpush %v1815_v43 }
 0x456   : > { %s2082_s5 = spop %2081 }
 0x457   : > { %s1817_s7 = smul.f32 200.0, %s2082_s5 }
 0x459   : > { %v1818_v9 = vstv %s1817_s7 }
 0x45a   : > { %1819 = vst [vmem:[%s313_s11] sm:$0x1] %v1818_v9 }
 0x45b   : > { %2464 = shalt.err (!%p2461_p0)
}
 0x45c   : > { %2095 = dma.vmem_to_hbm [thread:$0]  (%p2650_p7), %s1833_s22, 16, %s1835_s13, %s1821_s19  }
 0x45d PF: > { %s1846_s8 = sand.u32 1, %s2511_s15   ;;  %p2112_p3 = pnand %p1968_p11, %p2614_p6 }
 0x45e   : > { %s1847_s23 = scalar_lea.sflag [#allocation4], %s1846_s8 }
 0x45f   : > { %p2113_p5 = pneg %p2112_p3 }
 0x461   : > { %2506 = dma.done.wait (%p2113_p5), %s1847_s23, 16  }
 0x462   : > { %2508 = vsyncadd (%p2113_p5), %s1847_s23, 4294967280  ;;  %s24_s20 = sadd.s32 1, %s2531_s20   ;;  %s3556_s28 = sld [smem:[#allocation16_spill]] }
 0x463   : > { %p21_p9 = scmp.ge.s32.totalorder %s24_s20, 4   ;;  %s3557_s17 = sld [smem:[#allocation19_spill]] }
 0x464   : > { %s3558_s18 = sld [smem:[#allocation17_spill]]  ;;  %s3560_s15 = smov %s2515_s16 }
 0x465   : > { %s3559_s19 = sld [smem:[#allocation18_spill]]  ;;  %23 = sbr.rel (!%p21_p9) target bundleno = 12 (0xc), region = 117 }
 0x468   : > { %s3561_s16 = smov %s3556_s28 }
 0x46a   :  { %1852 = vsyncpa [#allocation3], 1 }
 0x46b   :  { %1854 = vsyncpa [#allocation3 + $0x1], 1 }
 0x46c   :  { %1855 = vsyncpa [#allocation6], 1 }
 0x46d   :  { %1857 = vsyncpa [#allocation6 + $0x1], 1 }
 0x46e   :  { %1858 = vsyncpa [#allocation9], 1 }
 0x46f   :  { %1859 = vsyncpa [#allocation4], 1 }
 0x470   :  { %1861 = vsyncpa [#allocation4 + $0x1], 1 }

</bundles_post_ra>
